<compile_context>
chip_gen: v6e
topology: v6e:2x2x1
jax: 0.10.0
libtpu: 0.0.40
codegen_flags: <defaults>
</compile_context>

<pallas_src>
import functools

import jax
import jax.numpy as jnp
from jax.experimental import pallas as pl
from jax.experimental.pallas import tpu as pltpu

# ----- module hyper-parameters (Prompt hard-codes 10 x 5 x 1000) -------------
EMBED_DIM = 1000
NUM_PROMPTS = 10
PROMPT_LEN = 5
TOP_K = 5
SLOT_DIM = PROMPT_LEN * EMBED_DIM                     # 5000
PROMPT_FEATURES = TOP_K * SLOT_DIM                    # 25000
NUM_FEATURES = PROMPT_FEATURES + EMBED_DIM            # 26000
NUM_CLASSES = 32          # args.num_classes (small, synthetic)
BASE_CLASS = 20           # args.base_class
TEMPERATURE = 16.0        # args.temperature
MODE = "ft_cos"           # 'cos' branch of forward_metric
CPAD = 128                # classes padded to a lane-dense output width


def _vmem():
    return pl.BlockSpec(memory_space=pltpu.MemorySpace.VMEM)


def _smem():
    return pl.BlockSpec(memory_space=pltpu.MemorySpace.SMEM)


# -------- Kernel A: encoder stub + x-norm + prompt similarity (fused) --------
# TODO(synk): the real backbone (resnet20 / resnet18 / efficientnet_b0) is not
# part of the provided module source; it is replaced by one linear projection
# to the 1000-d embedding the Prompt module expects.
def encoder_prompt_kernel(x_ref, w_ref, pn_ref,
                          feat_ref, xn_ref, sim_ref, xsum_ref):
    x = x_ref[...]                                       # (B, CHW)  f32
    w = w_ref[...]                                       # (CHW, 1000) bf16
    feat = jnp.dot(x.astype(jnp.bfloat16), w,
                   preferred_element_type=jnp.float32)   # (B, 1000) f32
    feat_ref[...] = feat
    # Prompt.l2_normalize(x, axis=1): x * rsqrt(max(sum(x^2), 1e-12))
    x_sq = jnp.sum(feat * feat, axis=1, keepdims=True)
    xn = feat * jax.lax.rsqrt(jnp.maximum(x_sq, 1e-12))
    xn_ref[...] = xn
    # similarity = x_embed_norm @ prompt_norm.T  -> (B, 10)
    sim_ref[...] = jax.lax.dot_general(
        xn, pn_ref[...], (((1,), (1,)), ((), ())),
        preferred_element_type=jnp.float32)
    # batch-sum of x_embed_norm, used for the algebraic reduce_sim later.
    xsum_ref[...] = jnp.sum(xn, axis=0, keepdims=True)   # (1, 1000)


# -------- Kernel B: lane-dense cosine classifier ------------------------------
# logits[b, c] = T * (feat[b] @ wf_n[c] + p_dot[c]) / max(sqrt(||feat_b||^2 + p_sq), eps)
# where p_dot / p_sq are the (precomputed + gathered) prompt-prefix terms.
def cos_classifier_kernel(feat_ref, pdot_ref, psq_ref, wf_ref, o_ref,
                          *, temperature):
    feat = feat_ref[...]                                 # (B, 1000)   f32
    p_sq = psq_ref[0, 0]                                 # scalar (SMEM)
    f_sq = jnp.sum(feat * feat, axis=1, keepdims=True)   # (B, 1)
    # F.normalize(p=2, dim=-1): v / max(||v||, 1e-12); divide on the EUP slot.
    inv_norm = pl.reciprocal(
        jnp.maximum(jnp.sqrt(f_sq + p_sq), 1e-12), approx=True)         # (B, 1)
    f_dot = jax.lax.dot_general(                                         # (B, CPAD)
        feat.astype(jnp.bfloat16), wf_ref[...],
        (((1,), (1,)), ((), ())), preferred_element_type=jnp.float32)
    o_ref[...] = temperature * (f_dot + pdot_ref[...]) * inv_norm


# ------------------ one-time (batch-invariant) parameter prep ----------------
def prepare_params(prompt, prompt_key, fc_w, dummy_w, w_enc):
    """Hoist all parameter-only transforms out of the per-forward hot path."""
    # Prompt.l2_normalize(prompt_key, axis=1) — parameter-only.
    pk_sq = jnp.sum(prompt_key * prompt_key, axis=1, keepdims=True)
    prompt_norm = prompt_key * jax.lax.rsqrt(jnp.maximum(pk_sq, 1e-12))

    # Classifier weight: cat([fc[:base], dummy], 0), row L2-normalized ONCE
    # (F.normalize semantics), then zero-padded to CPAD rows so the kernel
    # writes a lane-dense (B, 128) tile.
    w_cls = jnp.concatenate([fc_w[:BASE_CLASS], dummy_w], axis=0)   # (C, 26000)
    w_n = w_cls / jnp.maximum(
        jnp.sqrt(jnp.sum(w_cls * w_cls, axis=1, keepdims=True)), 1e-12)
    w_pad = jnp.zeros((CPAD, NUM_FEATURES), jnp.float32).at[:w_n.shape[0]].set(w_n)

    # Per-(slot, prompt) prompt-prefix contribution table (f32, ~26 KB):
    #   ptable[s, p, c] = prompt[p].reshape(5000) @ w_n_pad[c, s*5000:(s+1)*5000]
    prompt_resh = prompt.reshape(NUM_PROMPTS, SLOT_DIM)             # (10, 5000)
    w_prompt_cols = w_pad[:, :PROMPT_FEATURES].reshape(CPAD, TOP_K, SLOT_DIM)
    ptable = jnp.einsum("pd,csd->spc", prompt_resh, w_prompt_cols)  # (5, 10, 128)
    prompt_sq = jnp.sum(prompt_resh * prompt_resh, axis=1)          # (10,)

    return dict(
        prompt_resh=prompt_resh.astype(jnp.float32),                # (10, 5000)
        prompt_norm=prompt_norm.astype(jnp.float32),                # (10, 1000)
        ptable=ptable.astype(jnp.float32),                          # (5, 10, 128)
        prompt_sq=prompt_sq.astype(jnp.float32),                    # (10,)
        w_cls_feat=w_pad[:, PROMPT_FEATURES:].astype(jnp.bfloat16), # (128, 1000)
        w_enc=w_enc.astype(jnp.bfloat16),
    )


# ----------------------------- MYNET.forward ---------------------------------
def mynet_forward(params, images):
    assert "cos" in MODE
    b = images.shape[0]
    x_flat = images.reshape(b, -1)                       # NCHW -> (B, C*H*W)

    feat, xn, sim, xn_sum = pl.pallas_call(
        encoder_prompt_kernel,
        out_shape=(
            jax.ShapeDtypeStruct((b, EMBED_DIM), jnp.float32),
            jax.ShapeDtypeStruct((b, EMBED_DIM), jnp.float32),
            jax.ShapeDtypeStruct((b, NUM_PROMPTS), jnp.float32),
            jax.ShapeDtypeStruct((1, EMBED_DIM), jnp.float32),
        ),
        in_specs=[_vmem(), _vmem(), _vmem()],
        out_specs=(_vmem(), _vmem(), _vmem(), _vmem()),
    )(x_flat, params["w_enc"], params["prompt_norm"])

    # ----- data-dependent integer glue (topk / counts / sort) ----------------
    # TODO(synk): this 10-wide selection could move into kernel A (iterative
    # max + one-hot counts) to shave a few more tiny dispatches.
    _, idx = jax.lax.top_k(sim, TOP_K)                               # (B, 5)
    counts = jnp.zeros((NUM_PROMPTS,), jnp.int32).at[idx.reshape(-1)].add(1)
    _, major_prompt_id = jax.lax.top_k(counts, TOP_K)
    major_prompt_id = jnp.sort(major_prompt_id)                      # (5,)
    idx_b = jnp.tile(major_prompt_id[None, :], (b, 1))               # (B, 5)

    # ----- prompt-prefix terms from the init-time tables (replaces the old
    # (1,25000)x(25000,C) matmul + 1.6 MB weight DMA) -------------------------
    p_dot = jnp.sum(params["ptable"][jnp.arange(TOP_K), major_prompt_id],
                    axis=0, keepdims=True)                           # (1, 128)
    p_sq = jnp.sum(params["prompt_sq"][major_prompt_id]).reshape(1, 1)

    logits_pad = pl.pallas_call(
        functools.partial(cos_classifier_kernel, temperature=TEMPERATURE),
        out_shape=jax.ShapeDtypeStruct((b, CPAD), jnp.float32),
        in_specs=[_vmem(), _vmem(), _smem(), _vmem()],
        out_specs=_vmem(),
    )(feat, p_dot, p_sq, params["w_cls_feat"])
    logits = logits_pad[:, :NUM_CLASSES]

    # ----- result-dict tensors the module returns (tiny, plain JAX) ----------
    key_sel = params["prompt_norm"][major_prompt_id]                 # (5, 1000)
    # reduce_sim = sum_{b,k,d} key_sel[k,d] * xn[b,d] / B
    #            = (sum_k key_sel[k]) . (sum_b xn[b]) / B
    reduce_sim = jnp.dot(jnp.sum(key_sel, axis=0), xn_sum[0]) / b
    prompt_flat = params["prompt_resh"][major_prompt_id].reshape(1, PROMPT_FEATURES)
    # The (B, 26000) prompted embedding is only materialized because the module
    # returns it; no kernel consumes it.
    prompted = jnp.concatenate(
        [jnp.broadcast_to(prompt_flat, (b, PROMPT_FEATURES)), feat], axis=1)

    res_prompt = {
        "prompt_idx": idx_b,
        "prompt_norm": params["prompt_norm"],
        "x_embed_norm": xn,
        "sim": sim,
        "selected_key": jnp.broadcast_to(key_sel[None], (b, TOP_K, EMBED_DIM)),
        "reduce_sim": reduce_sim,
        "prompted_embedding": prompted,
    }
    return logits, res_prompt


if __name__ == "__main__":
    key = jax.random.PRNGKey(0)
    k1, k2, k3, k4, k5 = jax.random.split(key, 5)

    # Prompt parameters: uniform(0, 0.01), shapes hard-coded in the module.
    prompt = jax.random.uniform(k1, (NUM_PROMPTS, PROMPT_LEN, EMBED_DIM),
                                jnp.float32, 0.0, 0.01)
    prompt_key_p = jax.random.uniform(k2, (NUM_PROMPTS, EMBED_DIM),
                                      jnp.float32, 0.0, 0.01)
    # fc: orthogonal init, (num_classes, num_features); dummy = fc[base_class:]
    fc_w = jax.nn.initializers.orthogonal()(k3, (NUM_CLASSES, NUM_FEATURES),
                                            jnp.float32)
    dummy_w = fc_w[BASE_CLASS:, :]
    # Encoder stub projection weights (deterministic).
    c, h, w = 3, 16, 16
    w_enc = 0.02 * jax.random.normal(k4, (c * h * w, EMBED_DIM), jnp.float32)

    images = jax.random.normal(k5, (2, c, h, w), jnp.float32)   # NCHW

    params = prepare_params(prompt, prompt_key_p, fc_w, dummy_w, w_enc)

    logits, res = jax.jit(mynet_forward)(params, images)
    jax.block_until_ready((logits, res))
    assert logits.shape == (2, NUM_CLASSES)
    assert res["prompted_embedding"].shape == (2, NUM_FEATURES)
    assert res["prompt_idx"].shape == (2, TOP_K)
    assert res["selected_key"].shape == (2, TOP_K, EMBED_DIM)
    assert bool(jnp.isfinite(res["reduce_sim"]))
    assert bool(jnp.all(jnp.isfinite(logits)))
    print("KERNEL_OK")
</pallas_src>

<mosaic_0001>
module attributes {stable_mosaic.version = 11 : i64} {
  func.func @encoder_prompt_kernel(%arg0: memref<2x768xf32, #tpu.memory_space<vmem>>, %arg1: memref<768x1000xbf16, #tpu.memory_space<vmem>>, %arg2: memref<10x1000xf32, #tpu.memory_space<vmem>>, %arg3: memref<2x1000xf32, #tpu.memory_space<vmem>>, %arg4: memref<2x1000xf32, #tpu.memory_space<vmem>>, %arg5: memref<2x10xf32, #tpu.memory_space<vmem>>, %arg6: memref<1x1000xf32, #tpu.memory_space<vmem>>) attributes {dimension_semantics = [], scalar_prefetch = 0 : i64, scratch_operands = 0 : i64, tpu.core_type = #tpu.core_type<tc>} {
    %c0 = arith.constant 0 : index
    %c0_0 = arith.constant 0 : index
    %0 = vector.load %arg0[%c0, %c0_0] : memref<2x768xf32, #tpu.memory_space<vmem>>, vector<2x768xf32>
    %c0_1 = arith.constant 0 : index
    %c0_2 = arith.constant 0 : index
    %1 = vector.load %arg1[%c0_1, %c0_2] : memref<768x1000xbf16, #tpu.memory_space<vmem>>, vector<768x1000xbf16>
    %2 = arith.truncf %0 : vector<2x768xf32> to vector<2x768xbf16>
    %cst = arith.constant dense<0.000000e+00> : vector<2x1000xf32>
    %3 = tpu.matmul %2, %1, %cst {dimension_numbers = #tpu.dot_dimension_numbers<[1], [0], [0], [1], [0, 0, 1, 1], [], []>} : vector<2x768xbf16>, vector<768x1000xbf16>, vector<2x1000xf32> -> vector<2x1000xf32>
    %c0_3 = arith.constant 0 : index
    %c0_4 = arith.constant 0 : index
    %4 = vector.load %arg3[%c0_3, %c0_4] : memref<2x1000xf32, #tpu.memory_space<vmem>>, vector<2x1000xf32>
    tpu.vector_store %arg3[%c0_3, %c0_4], %3 {strides = array<i32>} : memref<2x1000xf32, #tpu.memory_space<vmem>>, vector<2x1000xf32>,
    %5 = arith.mulf %3, %3 : vector<2x1000xf32>
    %cst_5 = arith.constant dense<0.000000e+00> : vector<2xf32>
    %6 = vector.multi_reduction <add>, %5, %cst_5 [1] : vector<2x1000xf32> to vector<2xf32>
    %7 = vector.shape_cast %6 : vector<2xf32> to vector<2x1xf32>
    %cst_6 = arith.constant 9.99999996E-13 : f32
    %8 = vector.broadcast %cst_6 : f32 to vector<2x1xf32>
    %9 = arith.maximumf %7, %8 : vector<2x1xf32>
    %10 = math.rsqrt %9 : vector<2x1xf32>
    %11 = vector.broadcast %10 : vector<2x1xf32> to vector<2x1000xf32>
    %12 = arith.mulf %3, %11 : vector<2x1000xf32>
    %c0_7 = arith.constant 0 : index
    %c0_8 = arith.constant 0 : index
    %13 = vector.load %arg4[%c0_7, %c0_8] : memref<2x1000xf32, #tpu.memory_space<vmem>>, vector<2x1000xf32>
    tpu.vector_store %arg4[%c0_7, %c0_8], %12 {strides = array<i32>} : memref<2x1000xf32, #tpu.memory_space<vmem>>, vector<2x1000xf32>,
    %c0_9 = arith.constant 0 : index
    %c0_10 = arith.constant 0 : index
    %14 = vector.load %arg2[%c0_9, %c0_10] : memref<10x1000xf32, #tpu.memory_space<vmem>>, vector<10x1000xf32>
    %cst_11 = arith.constant dense<0.000000e+00> : vector<2x10xf32>
    %15 = tpu.matmul %12, %14, %cst_11 {dimension_numbers = #tpu.dot_dimension_numbers<[1], [1], [0], [0], [0, 0, 1, 0], [], []>} : vector<2x1000xf32>, vector<10x1000xf32>, vector<2x10xf32> -> vector<2x10xf32>
    %c0_12 = arith.constant 0 : index
    %c0_13 = arith.constant 0 : index
    %16 = vector.load %arg5[%c0_12, %c0_13] : memref<2x10xf32, #tpu.memory_space<vmem>>, vector<2x10xf32>
    tpu.vector_store %arg5[%c0_12, %c0_13], %15 {strides = array<i32>} : memref<2x10xf32, #tpu.memory_space<vmem>>, vector<2x10xf32>,
    %cst_14 = arith.constant dense<0.000000e+00> : vector<1000xf32>
    %17 = vector.multi_reduction <add>, %12, %cst_14 [0] : vector<2x1000xf32> to vector<1000xf32>
    %18 = vector.shape_cast %17 : vector<1000xf32> to vector<1x1000xf32>
    %c0_15 = arith.constant 0 : index
    %c0_16 = arith.constant 0 : index
    %19 = vector.load %arg6[%c0_15, %c0_16] : memref<1x1000xf32, #tpu.memory_space<vmem>>, vector<1x1000xf32>
    tpu.vector_store %arg6[%c0_15, %c0_16], %18 {strides = array<i32>} : memref<1x1000xf32, #tpu.memory_space<vmem>>, vector<1x1000xf32>,
    return
  }
}

module attributes {stable_mosaic.version = 11 : i64} {
  func.func @cos_classifier_kernel(%arg0: memref<2x1000xf32, #tpu.memory_space<vmem>>, %arg1: memref<1x128xf32, #tpu.memory_space<vmem>>, %arg2: memref<1x1xf32, #tpu.memory_space<smem>>, %arg3: memref<128x1000xbf16, #tpu.memory_space<vmem>>, %arg4: memref<2x128xf32, #tpu.memory_space<vmem>>) attributes {dimension_semantics = [], scalar_prefetch = 0 : i64, scratch_operands = 0 : i64, tpu.core_type = #tpu.core_type<tc>} {
    %c0 = arith.constant 0 : index
    %c0_0 = arith.constant 0 : index
    %0 = vector.load %arg0[%c0, %c0_0] : memref<2x1000xf32, #tpu.memory_space<vmem>>, vector<2x1000xf32>
    %c0_1 = arith.constant 0 : index
    %c0_2 = arith.constant 0 : index
    %1 = memref.load %arg2[%c0_1, %c0_2] : memref<1x1xf32, #tpu.memory_space<smem>>
    %2 = arith.mulf %0, %0 : vector<2x1000xf32>
    %cst = arith.constant dense<0.000000e+00> : vector<2xf32>
    %3 = vector.multi_reduction <add>, %2, %cst [1] : vector<2x1000xf32> to vector<2xf32>
    %4 = vector.shape_cast %3 : vector<2xf32> to vector<2x1xf32>
    %5 = vector.broadcast %1 : f32 to vector<2x1xf32>
    %6 = arith.addf %4, %5 : vector<2x1xf32>
    %7 = math.sqrt %6 : vector<2x1xf32>
    %cst_3 = arith.constant 9.99999996E-13 : f32
    %8 = vector.broadcast %cst_3 : f32 to vector<2x1xf32>
    %9 = arith.maximumf %7, %8 : vector<2x1xf32>
    %10 = tpu.reciprocal %9 {approx = true} : vector<2x1xf32> -> vector<2x1xf32>
    %11 = arith.truncf %0 : vector<2x1000xf32> to vector<2x1000xbf16>
    %c0_4 = arith.constant 0 : index
    %c0_5 = arith.constant 0 : index
    %12 = vector.load %arg3[%c0_4, %c0_5] : memref<128x1000xbf16, #tpu.memory_space<vmem>>, vector<128x1000xbf16>
    %cst_6 = arith.constant dense<0.000000e+00> : vector<2x128xf32>
    %13 = tpu.matmul %11, %12, %cst_6 {dimension_numbers = #tpu.dot_dimension_numbers<[1], [1], [0], [0], [0, 0, 1, 0], [], []>} : vector<2x1000xbf16>, vector<128x1000xbf16>, vector<2x128xf32> -> vector<2x128xf32>
    %c0_7 = arith.constant 0 : index
    %c0_8 = arith.constant 0 : index
    %14 = vector.load %arg1[%c0_7, %c0_8] : memref<1x128xf32, #tpu.memory_space<vmem>>, vector<1x128xf32>
    %15 = vector.broadcast %14 : vector<1x128xf32> to vector<2x128xf32>
    %16 = arith.addf %13, %15 : vector<2x128xf32>
    %cst_9 = arith.constant 1.600000e+01 : f32
    %17 = vector.broadcast %cst_9 : f32 to vector<2x128xf32>
    %18 = arith.mulf %17, %16 : vector<2x128xf32>
    %19 = vector.broadcast %10 : vector<2x1xf32> to vector<2x128xf32>
    %20 = arith.mulf %18, %19 : vector<2x128xf32>
    %c0_10 = arith.constant 0 : index
    %c0_11 = arith.constant 0 : index
    %21 = vector.load %arg4[%c0_10, %c0_11] : memref<2x128xf32, #tpu.memory_space<vmem>>, vector<2x128xf32>
    tpu.vector_store %arg4[%c0_10, %c0_11], %20 {strides = array<i32>} : memref<2x128xf32, #tpu.memory_space<vmem>>, vector<2x128xf32>,
    return
  }
}

</mosaic_0001>

<bundles_post_ra>
// kernel: mynet_forward.3
= control target key start
LH: loop header
LB: loop body
LE: loop exit
PB: predicated region body
PF: predicated region fallthrough
CT: control target
= control target key end

     0   :  { %v31_v3 = vlaneseq  ;;  %v843_v9 = vmov 1983009808   ;;  %vm69_vm0 = vcmask 1041408   ;;  %s1134_s0 = inlined_call_operand.vmem [shape: f32[2,1000], index: 0, kind: input, shape index: {}]   ;;  %s1135_s1 = inlined_call_operand.vmem [shape: f32[1,128], index: 1, kind: input, shape index: {}]   ;;  %s1136_s2 = inlined_call_operand.<no memory space> [shape: f32[1,1], index: 2, kind: input, shape index: {}]   ;;  %s1137_s3 = inlined_call_operand.vmem [shape: bf16[128,1000], index: 3, kind: input, shape index: {}]   ;;  %s1138_s4 = inlined_call_operand.hbm [shape: f32[2,128], index: 4, kind: output, shape index: {}]  }
   0x1   :  { %v207_v0 = vld [vmem:[%s1137_s3 + $0x1c0] sm:$0xff]  ;;  %v208_v2 = vld [vmem:[%s1137_s3 + $0x1c8] sm:$0xff]  ;;  %v29_v10 = vunpack.c.l.s4 %v843_v9 }
   0x2   :  { %v211_v1 = vld [vmem:[%s1137_s3 + $0x1e0] sm:$0xff]  ;;  %v212_v5 = vld [vmem:[%s1137_s3 + $0x1e8] sm:$0xff]  ;;  %v32_v18 = vshrl.u32 %v31_v3, 7 }
   0x3   :  { %v797_v4 = vcombine.high %v207_v0, %v211_v1  ;;  %v796_v6 = vcombine.low %v207_v0, %v211_v1  ;;  %v199_v7 = vld [vmem:[%s1137_s3 + $0x180] sm:$0xff]  ;;  %v799_v11 = vcombine.high %v208_v2, %v212_v5  ;;  %v798_v12 = vcombine.low %v208_v2, %v212_v5  ;;  %v200_v14 = vld [vmem:[%s1137_s3 + $0x188] sm:$0xff] }
   0x4   :  { %v203_v8 = vld [vmem:[%s1137_s3 + $0x1a0] sm:$0xff]  ;;  %v204_v15 = vld [vmem:[%s1137_s3 + $0x1a8] sm:$0xff]  ;;  %v30_v17 = vunpack.c.0.s8 %v29_v10 }
   0x5   :  { %v789_v13 = vcombine.high %v199_v7, %v203_v8  ;;  %562 = vmatprep.subr.bf16.mxu0 %v797_v4  ;;  %v791_v16 = vcombine.high %v200_v14, %v204_v15  ;;  %602 = vmatprep.subr.bf16.mxu1 %v799_v11  ;;  %v191_v19 = vld [vmem:[%s1137_s3 + $0x140] sm:$0xff]  ;;  %v192_v21 = vld [vmem:[%s1137_s3 + $0x148] sm:$0xff]  ;;  %v788_v24 = vcombine.low %v199_v7, %v203_v8 }
   0x6   :  { %563 = vmatpush1.bf16.xpose.msra.mxu0 %v796_v6  ;;  %603 = vmatpush1.bf16.xpose.msra.mxu1 %v798_v12  ;;  %v195_v20 = vld [vmem:[%s1137_s3 + $0x160] sm:$0xff]  ;;  %v196_v22 = vld [vmem:[%s1137_s3 + $0x168] sm:$0xff]  ;;  %v906_v23 = vsub.s32 %v30_v17, %v32_v18  ;;  %v790_v25 = vcombine.low %v200_v14, %v204_v15 }
   0x7   :  { %564 = vmatprep.subr.bf16.mxu0 %v789_v13  ;;  %604 = vmatprep.subr.bf16.mxu1 %v791_v16  ;;  %v781_v26 = vcombine.high %v191_v19, %v195_v20  ;;  %v783_v27 = vcombine.high %v192_v21, %v196_v22  ;;  %v20_v28 = vld [vmem:[%s1134_s0] sm:$0xff]  ;;  %v184_v37 = vld [vmem:[%s1137_s3 + $0x108] sm:$0xff]  ;;  %v780_v40 = vcombine.low %v191_v19, %v195_v20 }
   0x8   :  { %v23_v29 = vmul.f32 %v20_v28, %v20_v28  ;;  %v912_v30 = vrot.slane %v20_v28, %v906_v23  ;;  %v101_v31 = vcombine.high %v20_v28, %v20_v28  ;;  %v183_v33 = vld [vmem:[%s1137_s3 + $0x100] sm:$0xff]  ;;  %v188_v38 = vld [vmem:[%s1137_s3 + $0x128] sm:$0xff]  ;;  %v782_v43 = vcombine.low %v192_v21, %v196_v22 }
   0x9   :  { %v187_v34 = vld [vmem:[%s1137_s3 + $0x120] sm:$0xff]  ;;  %v775_v45 = vcombine.high %v184_v37, %v188_v38 }
   0xa   :  { %v116_v32 = vcombine.high %v912_v30, %v912_v30  ;;  %v34_v35 = vrot.slane %v23_v29, %v906_v23  ;;  %v924_v36 = vrot.slane %v101_v31, %v906_v23  ;;  %v27_v41 = vcombine.high %v23_v29, %v23_v29  ;;  %v175_v49 = vld [vmem:[%s1137_s3 + $0xc0] sm:$0xff] }
   0xb   :  { %v773_v44 = vcombine.high %v183_v33, %v187_v34  ;;  %v179_v50 = vld [vmem:[%s1137_s3 + $0xe0] sm:$0xff] }
   0xc   :  { %v144_v39 = vpack.c.bf16 %v116_v32, %v116_v32  ;;  %v117_v42 = vcombine.high %v924_v36, %v924_v36  ;;  %v42_v46 = vcombine.high %v34_v35, %v34_v35  ;;  %v41_v48 = vrot.slane %v27_v41, %v906_v23 }
   0xd   :  { %v70_v51 = vsel %vm69_vm0, %v34_v35, 0.0 }
   0xe   :  { %565 = vmatpush1.bf16.xpose.msra.mxu0 %v788_v24  ;;  %605 = vmatpush1.bf16.xpose.msra.mxu1 %v790_v25  ;;  %v146_v47 = vpack.c.bf16 %v117_v42, %v117_v42  ;;  %v71_v52 = vsel %vm69_vm0, %v42_v46, 0.0 }
   0xf   :  { %566 = vmatprep.subr.bf16.mxu0 %v781_v26  ;;  %606 = vmatprep.subr.bf16.mxu1 %v783_v27 }
  0x10   :  { %594 = vmatprep.mubr.bf16.mxu0 %v144_v39  ;;  %634 = vmatprep.mubr.bf16.mxu1 %v146_v47 }
  0x16   :  { %567 = vmatpush1.bf16.xpose.msra.mxu0 %v780_v40  ;;  %607 = vmatpush1.bf16.xpose.msra.mxu1 %v782_v43 }
  0x17   :  { %568 = vmatprep.subr.bf16.mxu0 %v773_v44  ;;  %608 = vmatprep.subr.bf16.mxu1 %v775_v45 }
  0x18   :  { %10 = vsyncpa [#allocation4], 0  ;;  %v176_v53 = vld [vmem:[%s1137_s3 + $0xc8] sm:$0xff]  ;;  %v772_v56 = vcombine.low %v183_v33, %v187_v34  ;;  %v73_v58 = vsel %vm69_vm0, %v41_v48, 0.0  ;;  %v774_v59 = vcombine.low %v184_v37, %v188_v38  ;;  %v765_v60 = vcombine.high %v175_v49, %v179_v50  ;;  %v167_v8 = vld [vmem:[%s1137_s3 + $0x80] sm:$0xff] }
  0x19   :  { %v180_v54 = vld [vmem:[%s1137_s3 + $0xe8] sm:$0xff]  ;;  %v43_v61 = vcombine.high %v41_v48, %v41_v48  ;;  %v72_v62 = vadd.f32 %v71_v52, %v70_v51  ;;  %v171_v9 = vld [vmem:[%s1137_s3 + $0xa0] sm:$0xff]  ;;  %vm83_vm1 = vcmask 844800   ;;  %v764_v15 = vcombine.low %v175_v49, %v179_v50  ;;  %v209_v43 = vld [vmem:[%s1137_s3 + $0x1d0] sm:$0xff] }
  0x1a   :  { %v952_v55 = vld [vmem:[%s1134_s0 + $0x8] sm:$0xff]  ;;  %v767_v63 = vcombine.high %v176_v53, %v180_v54  ;;  %v766_v17 = vcombine.low %v176_v53, %v180_v54  ;;  %v757_v18 = vcombine.high %v167_v8, %v171_v9  ;;  %v159_v25 = vld [vmem:[%s1137_s3 + $0x40] sm:$0xff]  ;;  %v756_v29 = vcombine.low %v167_v8, %v171_v9  ;;  %v213_v44 = vld [vmem:[%s1137_s3 + $0x1f0] sm:$0xff] }
  0x1b   :  { %v24_v57 = vmul.f32 %v952_v55, %v952_v55  ;;  %v74_v2 = vadd.f32 %v73_v58, %v72_v62  ;;  %v75_v3 = vsel %vm69_vm0, %v43_v61, 0.0  ;;  %v168_v11 = vld [vmem:[%s1137_s3 + $0x88] sm:$0xff]  ;;  %v163_v26 = vld [vmem:[%s1137_s3 + $0x60] sm:$0xff]  ;;  %v210_v45 = vld [vmem:[%s1137_s3 + $0x1d8] sm:$0xff]  ;;  %v118_v47 = vcombine.high %v952_v55, %v952_v55 }
  0x1c   :  { %v172_v12 = vld [vmem:[%s1137_s3 + $0xa8] sm:$0xff]  ;;  %v749_v32 = vcombine.high %v159_v25, %v163_v26  ;;  %v151_v34 = vld [vmem:[%s1137_s3] sm:$0xff]  ;;  %v748_v39 = vcombine.low %v159_v25, %v163_v26  ;;  %v214_v46 = vld [vmem:[%s1137_s3 + $0x1f8] sm:$0xff]  ;;  %v801_v50 = vcombine.high %v209_v43, %v213_v44  ;;  %v1015_v52 = vrot.slane %v952_v55, %v906_v23 }
  0x1d   :  { %v44_v0 = vcombine.high %v24_v57, %v24_v57  ;;  %v51_v1 = vrot.slane %v24_v57, %v906_v23  ;;  %v76_v6 = vadd.f32 %v75_v3, %v74_v2  ;;  %v759_v20 = vcombine.high %v168_v11, %v172_v12  ;;  %v160_v27 = vld [vmem:[%s1137_s3 + $0x48] sm:$0xff]  ;;  %v155_v35 = vld [vmem:[%s1137_s3 + $0x20] sm:$0xff]  ;;  %v201_v54 = vld [vmem:[%s1137_s3 + $0x190] sm:$0xff] }
  0x1e   :  { %569 = vmatpush1.bf16.xpose.msra.mxu0 %v772_v56  ;;  %609 = vmatpush1.bf16.xpose.msra.mxu1 %v774_v59  ;;  %v164_v28 = vld [vmem:[%s1137_s3 + $0x68] sm:$0xff]  ;;  %v758_v31 = vcombine.low %v168_v11, %v172_v12  ;;  %v741_v41 = vcombine.high %v151_v34, %v155_v35  ;;  %v740_v48 = vcombine.low %v151_v34, %v155_v35  ;;  %vm534_vm2 = vcmask 850944   ;;  %v205_v56 = vld [vmem:[%s1137_s3 + $0x1b0] sm:$0xff]  ;;  %v202_v57 = vld [vmem:[%s1137_s3 + $0x198] sm:$0xff] }
  0x1f   :  { %v58_v4 = vrot.slane %v44_v0, %v906_v23  ;;  %570 = vmatprep.subr.bf16.mxu0 %v765_v60  ;;  %v59_v5 = vcombine.high %v51_v1, %v51_v1  ;;  %v77_v7 = vsel %vm69_vm0, %v51_v1, 0.0  ;;  %610 = vmatprep.subr.bf16.mxu1 %v767_v63  ;;  %v751_v33 = vcombine.high %v160_v27, %v164_v28  ;;  %v152_v37 = vld [vmem:[%s1137_s3 + $0x8] sm:$0xff]  ;;  %v206_v58 = vld [vmem:[%s1137_s3 + $0x1b8] sm:$0xff]  ;;  %v193_v2 = vld [vmem:[%s1137_s3 + $0x150] sm:$0xff] }
  0x20   :  { %v78_v13 = vadd.f32 %v77_v7, %v76_v6  ;;  %v156_v38 = vld [vmem:[%s1137_s3 + $0x28] sm:$0xff]  ;;  %v750_v40 = vcombine.low %v160_v27, %v164_v28  ;;  %v803_v51 = vcombine.high %v210_v45, %v214_v46  ;;  %v1018_v53 = vrot.slane %v118_v47, %v906_v23  ;;  %v194_v3 = vld [vmem:[%s1137_s3 + $0x158] sm:$0xff]  ;;  %v185_v9 = vld [vmem:[%s1137_s3 + $0x110] sm:$0xff] }
  0x21   :  { %v60_v10 = vcombine.high %v58_v4, %v58_v4  ;;  %v79_v14 = vsel %vm69_vm0, %v59_v5, 0.0  ;;  %v81_v16 = vsel %vm69_vm0, %v58_v4, 0.0  ;;  %v743_v42 = vcombine.high %v152_v37, %v156_v38  ;;  %v198_v4 = vld [vmem:[%s1137_s3 + $0x178] sm:$0xff]  ;;  %v169_v26 = vld [vmem:[%s1137_s3 + $0x90] sm:$0xff] }
  0x22   :  { %v80_v19 = vadd.f32 %v79_v14, %v78_v13  ;;  %v742_v49 = vcombine.low %v152_v37, %v156_v38  ;;  %v133_v55 = vcombine.high %v1015_v52, %v1015_v52  ;;  %v143_v23 = vpack.c.bf16 %v912_v30, %v912_v30  ;;  %v186_v11 = vld [vmem:[%s1137_s3 + $0x118] sm:$0xff]  ;;  %v173_v27 = vld [vmem:[%s1137_s3 + $0xb0] sm:$0xff] }
  0x23   :  { %v84_v21 = vsel %vm83_vm1, %v60_v10, 0.0  ;;  %v134_v59 = vcombine.high %v1018_v53, %v1018_v53  ;;  %v145_v60 = vpack.c.bf16 %v924_v36, %v924_v36  ;;  %v800_v61 = vcombine.low %v209_v43, %v213_v44  ;;  %v197_v36 = vld [vmem:[%s1137_s3 + $0x170] sm:$0xff]  ;;  %v190_v12 = vld [vmem:[%s1137_s3 + $0x138] sm:$0xff] }
  0x24   :  { %v82_v22 = vadd.f32 %v81_v16, %v80_v19  ;;  %v802_v62 = vcombine.low %v210_v45, %v214_v46  ;;  %v793_v63 = vcombine.high %v201_v54, %v205_v56  ;;  %v795_v0 = vcombine.high %v202_v57, %v206_v58  ;;  %v189_v10 = vld [vmem:[%s1137_s3 + $0x130] sm:$0xff]  ;;  %v178_v19 = vld [vmem:[%s1137_s3 + $0xd8] sm:$0xff] }
  0x25   :  { %v148_v1 = vpack.c.bf16 %v133_v55, %v133_v55  ;;  %v150_v30 = vpack.c.bf16 %v134_v59, %v134_v59  ;;  %v792_v5 = vcombine.low %v201_v54, %v205_v56  ;;  %v794_v6 = vcombine.low %v202_v57, %v206_v58  ;;  %v170_v28 = vld [vmem:[%s1137_s3 + $0x98] sm:$0xff]  ;;  %v161_v35 = vld [vmem:[%s1137_s3 + $0x50] sm:$0xff] }
  0x26   :  { %571 = vmatpush1.bf16.xpose.msra.mxu0 %v764_v15  ;;  %611 = vmatpush1.bf16.xpose.msra.mxu1 %v766_v17  ;;  %v85_v24 = vadd.f32 %v84_v21, %v82_v22  ;;  %v785_v7 = vcombine.high %v193_v2, %v197_v36  ;;  %v787_v8 = vcombine.high %v194_v3, %v198_v4  ;;  %v177_v17 = vld [vmem:[%s1137_s3 + $0xd0] sm:$0xff]  ;;  %v162_v38 = vld [vmem:[%s1137_s3 + $0x58] sm:$0xff] }
  0x27   :  { %572 = vmatprep.subr.bf16.mxu0 %v757_v18  ;;  %612 = vmatprep.subr.bf16.mxu1 %v759_v20  ;;  %v784_v13 = vcombine.low %v193_v2, %v197_v36  ;;  %v786_v14 = vcombine.low %v194_v3, %v198_v4  ;;  %v777_v15 = vcombine.high %v185_v9, %v189_v10  ;;  %v181_v18 = vld [vmem:[%s1137_s3 + $0xf0] sm:$0xff]  ;;  %v182_v20 = vld [vmem:[%s1137_s3 + $0xf8] sm:$0xff] }
  0x28   :  { %86 = vadd.xlane.f32.xlu0 %v85_v24  ;;  %v779_v16 = vcombine.high %v186_v11, %v190_v12  ;;  %v776_v21 = vcombine.low %v185_v9, %v189_v10  ;;  %v778_v22 = vcombine.low %v186_v11, %v190_v12  ;;  %v769_v24 = vcombine.high %v177_v17, %v181_v18  ;;  %v165_v37 = vld [vmem:[%s1137_s3 + $0x70] sm:$0xff]  ;;  %v154_v46 = vld [vmem:[%s1137_s3 + $0x18] sm:$0xff] }
  0x29   :  { %v771_v25 = vcombine.high %v178_v19, %v182_v20  ;;  %v153_v44 = vld [vmem:[%s1137_s3 + $0x10] sm:$0xff]  ;;  %v158_v47 = vld [vmem:[%s1137_s3 + $0x38] sm:$0xff]  ;;  %v147_v55 = vpack.c.bf16 %v1015_v52, %v1015_v52 }
  0x2a   :  { %v157_v45 = vld [vmem:[%s1137_s3 + $0x30] sm:$0xff]  ;;  %v746_v56 = vcombine.low %v154_v46, %v158_v47 }
  0x2b   :  { %v744_v54 = vcombine.low %v153_v44, %v157_v45 }
  0x2e   :  { %573 = vmatpush1.bf16.xpose.msra.mxu0 %v756_v29  ;;  %613 = vmatpush1.bf16.xpose.msra.mxu1 %v758_v31  ;;  %v174_v29 = vld [vmem:[%s1137_s3 + $0xb8] sm:$0xff]  ;;  %v768_v31 = vcombine.low %v177_v17, %v181_v18 }
  0x2f   :  { %574 = vmatprep.subr.bf16.mxu0 %v749_v32  ;;  %614 = vmatprep.subr.bf16.mxu1 %v751_v33  ;;  %v770_v32 = vcombine.low %v178_v19, %v182_v20  ;;  %v761_v33 = vcombine.high %v169_v26, %v173_v27  ;;  %v763_v34 = vcombine.high %v170_v28, %v174_v29 }
  0x36   :  { %575 = vmatpush1.bf16.xpose.msra.mxu0 %v748_v39  ;;  %615 = vmatpush1.bf16.xpose.msra.mxu1 %v750_v40  ;;  %v166_v39 = vld [vmem:[%s1137_s3 + $0x78] sm:$0xff]  ;;  %v760_v40 = vcombine.low %v169_v26, %v173_v27 }
  0x37   :  { %576 = vmatprep.subr.bf16.mxu0 %v741_v41  ;;  %616 = vmatprep.subr.bf16.mxu1 %v743_v42  ;;  %v762_v41 = vcombine.low %v170_v28, %v174_v29  ;;  %v753_v42 = vcombine.high %v161_v35, %v165_v37  ;;  %v755_v43 = vcombine.high %v162_v38, %v166_v39 }
  0x3e   :  { %577 = vmatpush1.bf16.xpose.msra.mxu0 %v740_v48  ;;  %617 = vmatpush1.bf16.xpose.msra.mxu1 %v742_v49  ;;  %v752_v48 = vcombine.low %v161_v35, %v165_v37  ;;  %v754_v49 = vcombine.low %v162_v38, %v166_v39 }
  0x3f   :  { %642 = vmatprep.subr.bf16.mxu0 %v801_v50  ;;  %804 = vmatprep.subr.msk.bf16.mxu1 %vm534_vm2, %v803_v51  ;;  %v745_v50 = vcombine.high %v153_v44, %v157_v45  ;;  %v747_v51 = vcombine.high %v154_v46, %v158_v47 }
  0x45   :  { %595 = vmatmul.mubr.bf16.vlgmr.msra.gmra.mxu0 %v143_v23  ;;  %635 = vmatmul.mubr.bf16.vlgmr.msra.gmra.mxu1 %v145_v60  ;;  %v149_v23 = vpack.c.bf16 %v1018_v53, %v1018_v53 }
  0x46   :  { %643 = vmatpush1.bf16.xpose.msra.mxu0 %v800_v61  ;;  %683 = vmatpush1.bf16.xpose.msra.mxu1 %v802_v62 }
  0x47   :  { %644 = vmatprep.subr.bf16.mxu0 %v793_v63  ;;  %805 = vmatprep.subr.msk.bf16.mxu1 %vm534_vm2, %v795_v0 }
  0x48   :  { %674 = vmatprep.mubr.bf16.mxu0 %v148_v1  ;;  %812 = vmatprep.mubr.msk.bf16.mxu1 %vm534_vm2, %v150_v30  ;;  %v88_v30 = vstv %s1136_s2  ;;  %s844_s2 = smov [#allocation3]  }
  0x49   :  { %s731_s16 = sshll.u32 %s844_s2, 4  ;;  %s732_s16 = int_to_ptr.vmem [resolvable:$true] %s731_s16 }
  0x4a   :  { %p826_p1 = scmp.lt.s32.totalorder %s732_s16, %s732_s16 }
  0x4e   :  { %645 = vmatpush1.bf16.xpose.msra.mxu0 %v792_v5  ;;  %685 = vmatpush1.bf16.xpose.msra.mxu1 %v794_v6  ;;  %v739_v6 = vld [vmem:[%s1135_s1] ss:$0 sm:$0xff]  ;;  %s821_s1 = scalar_lea.vmem %s732_s16, 32 }
  0x4f   :  { %646 = vmatprep.subr.bf16.mxu0 %v785_v7  ;;  %806 = vmatprep.subr.msk.bf16.mxu1 %vm534_vm2, %v787_v8  ;;  %p822_p0 = scmp.ne.s32.totalorder %s732_s16, %s821_s1  ;;  %p827_p2 = scmp.lt.s32.totalorder %s821_s1, %s821_s1 }
  0x51   :  { %p828_p3 = por %p827_p2, %p826_p1 }
  0x53   :  { %p829_p4 = pnand %p828_p3, %p822_p0 }
  0x56   :  { %647 = vmatpush1.bf16.xpose.msra.mxu0 %v784_v13  ;;  %687 = vmatpush1.bf16.xpose.msra.mxu1 %v786_v14 }
  0x57   :  { %648 = vmatprep.subr.bf16.mxu0 %v777_v15  ;;  %807 = vmatprep.subr.msk.bf16.mxu1 %vm534_vm2, %v779_v16 }
  0x5e   :  { %649 = vmatpush1.bf16.xpose.msra.mxu0 %v776_v21  ;;  %689 = vmatpush1.bf16.xpose.msra.mxu1 %v778_v22 }
  0x5f   :  { %650 = vmatprep.subr.bf16.mxu0 %v769_v24  ;;  %808 = vmatprep.subr.msk.bf16.mxu1 %vm534_vm2, %v771_v25 }
  0x66   :  { %651 = vmatpush1.bf16.xpose.msra.mxu0 %v768_v31  ;;  %691 = vmatpush1.bf16.xpose.msra.mxu1 %v770_v32 }
  0x67   :  { %652 = vmatprep.subr.bf16.mxu0 %v761_v33  ;;  %809 = vmatprep.subr.msk.bf16.mxu1 %vm534_vm2, %v763_v34 }
  0x6e   :  { %653 = vmatpush1.bf16.xpose.msra.mxu0 %v760_v40  ;;  %693 = vmatpush1.bf16.xpose.msra.mxu1 %v762_v41 }
  0x6f   :  { %654 = vmatprep.subr.bf16.mxu0 %v753_v42  ;;  %810 = vmatprep.subr.msk.bf16.mxu1 %vm534_vm2, %v755_v43 }
  0x76   :  { %655 = vmatpush1.bf16.xpose.msra.mxu0 %v752_v48  ;;  %695 = vmatpush1.bf16.xpose.msra.mxu1 %v754_v49 }
  0x77   :  { %656 = vmatprep.subr.bf16.mxu0 %v745_v50  ;;  %811 = vmatprep.subr.msk.bf16.mxu1 %vm534_vm2, %v747_v51 }
  0x7e   :  { %657 = vmatpush1.bf16.xpose.msra.mxu0 %v744_v54  ;;  %697 = vmatpush1.bf16.xpose.msra.mxu1 %v746_v56 }
  0x85   :  { %675 = vmatmul.mubr.bf16.vlgmr.msra.gmra.mxu0 %v147_v55  ;;  %715 = vmatmul.mubr.bf16.vlgmr.msra.gmra.mxu1 %v149_v23 }
  0xb1   :  { %v87_v1 = vpop.xlane.xlu0 %86 }
  0xb2   :  { %v89_v2 = vadd.f32 %v88_v30, %v87_v1 }
  0xb4   :  { %817 = vrsqrt.f32 %v89_v2  ;;  %vm92_vm3 = vcmp.eq.f32.partialorder %v89_v2, inf  ;;  %v95_v53 = vand.u32 2147483648, %v89_v2  ;;  %vm94_vm4 = vcmp.eq.f32.partialorder %v89_v2, 0.0 }
  0xc1   :  { %v818_v52 = vpop.eup %817 }
  0xc2   :  { %v91_v36 = vmul.f32 %v818_v52, %v89_v2 }
  0xc4   :  { %v93_v3 = vsel %vm92_vm3, %v89_v2, %v91_v36 }
  0xc5   :  { %v96_v4 = vsel %vm94_vm4, %v95_v53, %v93_v3 }
  0xc6   :  { %v97_v5 = vmax.f32 %v96_v4, 1e-12 }
  0xc8   :  { %819 = vrcp.f32 %v97_v5 }
  0xd5   :  { %v820_v18 = vpop.eup %819 }
 0x105   :  { %v596_v57 = vpop.f32.mrf.mxu0  ;;  %v636_v58 = vpop.f32.mrf.mxu1 }
 0x106   :  { %v597_v7 = vadd.f32 %v739_v6, %v596_v57 }
 0x107   :  { %v598_v59 = vpop.f32.mrf.mxu0  ;;  %v638_v60 = vpop.f32.mrf.mxu1 }
 0x108   :  { %v637_v8 = vadd.f32 %v636_v58, %v597_v7 }
 0x109   :  { %v599_v61 = vpop.f32.mrf.mxu0  ;;  %v639_v62 = vpop.f32.mrf.mxu1 }
 0x10b   :  { %v600_v63 = vpop.f32.mrf.mxu0  ;;  %v640_v0 = vpop.f32.mrf.mxu1 }
 0x145   :  { %v676_v9 = vpop.f32.mrf.mxu0  ;;  %v716_v11 = vpop.f32.mrf.mxu1 }
 0x146   :  { %v677_v10 = vadd.f32 %v676_v9, %v637_v8 }
 0x147   :  { %v678_v12 = vpop.f32.mrf.mxu0  ;;  %v718_v14 = vpop.f32.mrf.mxu1 }
 0x148   :  { %v717_v13 = vadd.f32 %v716_v11, %v677_v10 }
 0x149   :  { %v679_v15 = vpop.f32.mrf.mxu0  ;;  %v719_v17 = vpop.f32.mrf.mxu1 }
 0x14a   :  { %v722_v16 = vmul.f32 16.0, %v717_v13 }
 0x14b   :  { %v680_v19 = vpop.f32.mrf.mxu0  ;;  %v720_v20 = vpop.f32.mrf.mxu1 }
 0x14c   :  { %v723_v21 = vmul.f32 %v820_v18, %v722_v16 }
 0x14e   :  { %724 = vst [vmem:[#allocation3] sm:$0x3] %v723_v21 }
 0x14f   :  { %832 = shalt.err (!%p829_p4)
}
 0x150   :  { %734 = dma.vmem_to_hbm [thread:$0]  %s732_s16, 32, %s1138_s4, [#allocation4]  }
 0x151   :  { %841 = dma.done.wait [#allocation4], 32  }
 0x152   :  { %842 = vsyncadd [#allocation4], 4294967264 }
 0x153   :  { %738 = vsyncpa [#allocation4], 1 }

// kernel: mynet_forward.2
= control target key start
LH: loop header
LB: loop body
LE: loop exit
PB: predicated region body
PF: predicated region fallthrough
CT: control target
= control target key end

     0   :  { %v3859_v32 = vmov 1983009808   ;;  %v411_v34 = vlaneseq  ;;  %s5320_s0 = inlined_call_operand.vmem [shape: f32[2,768], index: 0, kind: input, shape index: {}]   ;;  %s5321_s1 = inlined_call_operand.vmem [shape: bf16[768,1000], index: 1, kind: input, shape index: {}]   ;;  %s5322_s2 = inlined_call_operand.vmem [shape: f32[10,1000], index: 2, kind: input, shape index: {}]   ;;  %s5323_s3 = inlined_call_operand.vmem [shape: f32[2,1000], index: 3, kind: output, shape index: {0}]   ;;  %s5324_s4 = inlined_call_operand.hbm [shape: f32[2,1000], index: 4, kind: output, shape index: {1}]   ;;  %s5325_s5 = inlined_call_operand.vmem [shape: f32[2,10], index: 5, kind: output, shape index: {2}]   ;;  %s5326_s6 = inlined_call_operand.vmem [shape: f32[1,1000], index: 6, kind: output, shape index: {3}]  }
   0x1   :  { %v77_v0 = vld [vmem:[%s5321_s1 + $0x1c0] sm:$0xff]  ;;  %v409_v33 = vunpack.c.l.s4 %v3859_v32 }
   0x2   :  { %v81_v1 = vld [vmem:[%s5321_s1 + $0x1e0] sm:$0xff]  ;;  %v3964_v44 = vshrl.u32 %v411_v34, 7 }
   0x3   :  { %v205_v2 = vld [vmem:[%s5321_s1 + $0x5c0] sm:$0xff]  ;;  %v3501_v3 = vcombine.high %v77_v0, %v81_v1  ;;  %v3500_v5 = vcombine.low %v77_v0, %v81_v1  ;;  %v410_v43 = vunpack.c.0.s8 %v409_v33 }
   0x4   :  { %v209_v4 = vld [vmem:[%s5321_s1 + $0x5e0] sm:$0xff] }
   0x5   :  { %v69_v6 = vld [vmem:[%s5321_s1 + $0x180] sm:$0xff]  ;;  %v3629_v8 = vcombine.high %v205_v2, %v209_v4  ;;  %v3628_v9 = vcombine.low %v205_v2, %v209_v4  ;;  %2364 = vmatprep.subr.bf16.mxu0 %v3501_v3  ;;  %v3979_v53 = vsub.s32 %v410_v43, %v3964_v44 }
   0x6   :  { %v73_v7 = vld [vmem:[%s5321_s1 + $0x1a0] sm:$0xff]  ;;  %2365 = vmatpush1.bf16.msra.mxu0 %v3500_v5 }
   0x7   :  { %v3493_v10 = vcombine.high %v69_v6, %v73_v7  ;;  %v197_v11 = vld [vmem:[%s5321_s1 + $0x580] sm:$0xff]  ;;  %2405 = vmatprep.subr.bf16.mxu1 %v3629_v8  ;;  %v3492_v18 = vcombine.low %v69_v6, %v73_v7 }
   0x8   :  { %v201_v12 = vld [vmem:[%s5321_s1 + $0x5a0] sm:$0xff]  ;;  %2406 = vmatpush1.bf16.msra.mxu1 %v3628_v9 }
   0x9   :  { %v61_v13 = vld [vmem:[%s5321_s1 + $0x140] sm:$0xff]  ;;  %v3621_v14 = vcombine.high %v197_v11, %v201_v12  ;;  %2366 = vmatprep.subr.bf16.mxu0 %v3493_v10  ;;  %v3620_v19 = vcombine.low %v197_v11, %v201_v12 }
   0xa   :  { %v65_v15 = vld [vmem:[%s5321_s1 + $0x160] sm:$0xff]  ;;  %2367 = vmatpush1.bf16.msra.mxu0 %v3492_v18 }
   0xb   :  { %v189_v16 = vld [vmem:[%s5321_s1 + $0x540] sm:$0xff]  ;;  %v3485_v20 = vcombine.high %v61_v13, %v65_v15  ;;  %2407 = vmatprep.subr.bf16.mxu1 %v3621_v14  ;;  %v3484_v26 = vcombine.low %v61_v13, %v65_v15 }
   0xc   :  { %v193_v17 = vld [vmem:[%s5321_s1 + $0x560] sm:$0xff]  ;;  %2408 = vmatpush1.bf16.msra.mxu1 %v3620_v19 }
   0xd   :  { %v3613_v21 = vcombine.high %v189_v16, %v193_v17  ;;  %v53_v22 = vld [vmem:[%s5321_s1 + $0x100] sm:$0xff]  ;;  %2368 = vmatprep.subr.bf16.mxu0 %v3485_v20  ;;  %v3612_v27 = vcombine.low %v189_v16, %v193_v17 }
   0xe   :  { %v57_v23 = vld [vmem:[%s5321_s1 + $0x120] sm:$0xff]  ;;  %2369 = vmatpush1.bf16.msra.mxu0 %v3484_v26 }
   0xf   :  { %v181_v24 = vld [vmem:[%s5321_s1 + $0x500] sm:$0xff]  ;;  %v3477_v28 = vcombine.high %v53_v22, %v57_v23  ;;  %2409 = vmatprep.subr.bf16.mxu1 %v3613_v21  ;;  %v3476_v37 = vcombine.low %v53_v22, %v57_v23 }
  0x10   :  { %v185_v25 = vld [vmem:[%s5321_s1 + $0x520] sm:$0xff]  ;;  %2410 = vmatpush1.bf16.msra.mxu1 %v3612_v27 }
  0x11   :  { %v3605_v29 = vcombine.high %v181_v24, %v185_v25  ;;  %v45_v30 = vld [vmem:[%s5321_s1 + $0xc0] sm:$0xff]  ;;  %2370 = vmatprep.subr.bf16.mxu0 %v3477_v28  ;;  %v3604_v38 = vcombine.low %v181_v24, %v185_v25 }
  0x12   :  { %v49_v31 = vld [vmem:[%s5321_s1 + $0xe0] sm:$0xff]  ;;  %2371 = vmatpush1.bf16.msra.mxu0 %v3476_v37 }
  0x13   :  { %v173_v35 = vld [vmem:[%s5321_s1 + $0x4c0] sm:$0xff]  ;;  %v3469_v39 = vcombine.high %v45_v30, %v49_v31  ;;  %2411 = vmatprep.subr.bf16.mxu1 %v3605_v29  ;;  %v3468_v47 = vcombine.low %v45_v30, %v49_v31 }
  0x14   :  { %v177_v36 = vld [vmem:[%s5321_s1 + $0x4e0] sm:$0xff]  ;;  %2412 = vmatpush1.bf16.msra.mxu1 %v3604_v38 }
  0x15   :  { %v3597_v40 = vcombine.high %v173_v35, %v177_v36  ;;  %v37_v41 = vld [vmem:[%s5321_s1 + $0x80] sm:$0xff]  ;;  %2372 = vmatprep.subr.bf16.mxu0 %v3469_v39  ;;  %v3596_v48 = vcombine.low %v173_v35, %v177_v36 }
  0x16   :  { %v41_v42 = vld [vmem:[%s5321_s1 + $0xa0] sm:$0xff]  ;;  %2373 = vmatpush1.bf16.msra.mxu0 %v3468_v47 }
  0x17   :  { %v165_v45 = vld [vmem:[%s5321_s1 + $0x480] sm:$0xff]  ;;  %v3461_v49 = vcombine.high %v37_v41, %v41_v42  ;;  %2413 = vmatprep.subr.bf16.mxu1 %v3597_v40  ;;  %v3460_v56 = vcombine.low %v37_v41, %v41_v42 }
  0x18   :  { %v169_v46 = vld [vmem:[%s5321_s1 + $0x4a0] sm:$0xff]  ;;  %2414 = vmatpush1.bf16.msra.mxu1 %v3596_v48 }
  0x19   :  { %v3589_v50 = vcombine.high %v165_v45, %v169_v46  ;;  %v29_v51 = vld [vmem:[%s5321_s1 + $0x40] sm:$0xff]  ;;  %2374 = vmatprep.subr.bf16.mxu0 %v3461_v49  ;;  %v3588_v57 = vcombine.low %v165_v45, %v169_v46 }
  0x1a   :  { %v33_v52 = vld [vmem:[%s5321_s1 + $0x60] sm:$0xff]  ;;  %2375 = vmatpush1.bf16.msra.mxu0 %v3460_v56 }
  0x1b   :  { %v157_v54 = vld [vmem:[%s5321_s1 + $0x440] sm:$0xff]  ;;  %v3453_v58 = vcombine.high %v29_v51, %v33_v52  ;;  %2415 = vmatprep.subr.bf16.mxu1 %v3589_v50  ;;  %v3452_v3 = vcombine.low %v29_v51, %v33_v52 }
  0x1c   :  { %v161_v55 = vld [vmem:[%s5321_s1 + $0x460] sm:$0xff]  ;;  %2416 = vmatpush1.bf16.msra.mxu1 %v3588_v57 }
  0x1d   :  { %v19_v59 = vld [vmem:[%s5320_s0] sm:$0xff]  ;;  %v3581_v60 = vcombine.high %v157_v54, %v161_v55  ;;  %2376 = vmatprep.subr.bf16.mxu0 %v3453_v58  ;;  %v3580_v6 = vcombine.low %v157_v54, %v161_v55 }
  0x1e   :  { %v21_v61 = vld [vmem:[%s5321_s1] sm:$0xff]  ;;  %v3997_v63 = vrot.slane %v19_v59, %v3979_v53  ;;  %v407_v0 = vcombine.high %v19_v59, %v19_v59  ;;  %2377 = vmatpush1.bf16.msra.mxu0 %v3452_v3 }
  0x1f   :  { %v25_v62 = vld [vmem:[%s5321_s1 + $0x20] sm:$0xff]  ;;  %2417 = vmatprep.subr.bf16.mxu1 %v3581_v60 }
  0x20   :  { %v149_v1 = vld [vmem:[%s5321_s1 + $0x400] sm:$0xff]  ;;  %v422_v4 = vcombine.high %v3997_v63, %v3997_v63  ;;  %v4008_v5 = vrot.slane %v407_v0, %v3979_v53  ;;  %v3445_v7 = vcombine.high %v21_v61, %v25_v62  ;;  %v3444_v15 = vcombine.low %v21_v61, %v25_v62  ;;  %2418 = vmatpush1.bf16.msra.mxu1 %v3580_v6 }
  0x21   :  { %v153_v2 = vld [vmem:[%s5321_s1 + $0x420] sm:$0xff] }
  0x22   :  { %v3573_v8 = vcombine.high %v149_v1, %v153_v2  ;;  %v141_v9 = vld [vmem:[%s5321_s1 + $0x3c0] sm:$0xff]  ;;  %v4016_v11 = vpack.c.bf16 %v422_v4, %v422_v4  ;;  %v423_v12 = vcombine.high %v4008_v5, %v4008_v5  ;;  %2378 = vmatprep.subr.bf16.mxu0 %v3445_v7  ;;  %v3572_v17 = vcombine.low %v149_v1, %v153_v2 }
  0x23   :  { %v145_v10 = vld [vmem:[%s5321_s1 + $0x3e0] sm:$0xff]  ;;  %2379 = vmatpush1.bf16.msra.mxu0 %v3444_v15 }
  0x24   :  { %v269_v13 = vld [vmem:[%s5321_s1 + $0x7c0] sm:$0xff]  ;;  %2396 = vmatprep.mubr.bf16.mxu0 %v4016_v11  ;;  %v4027_v16 = vpack.c.bf16 %v423_v12, %v423_v12  ;;  %v3565_v18 = vcombine.high %v141_v9, %v145_v10  ;;  %2419 = vmatprep.subr.bf16.mxu1 %v3573_v8  ;;  %v3564_v24 = vcombine.low %v141_v9, %v145_v10 }
  0x25   :  { %v273_v14 = vld [vmem:[%s5321_s1 + $0x7e0] sm:$0xff]  ;;  %2420 = vmatpush1.bf16.msra.mxu1 %v3572_v17 }
  0x26   :  { %v3693_v19 = vcombine.high %v269_v13, %v273_v14  ;;  %v133_v20 = vld [vmem:[%s5321_s1 + $0x380] sm:$0xff]  ;;  %2437 = vmatprep.mubr.bf16.mxu1 %v4027_v16  ;;  %2380 = vmatprep.subr.bf16.mxu0 %v3565_v18  ;;  %v3692_v25 = vcombine.low %v269_v13, %v273_v14 }
  0x27   :  { %v137_v21 = vld [vmem:[%s5321_s1 + $0x3a0] sm:$0xff]  ;;  %2381 = vmatpush2.bf16.msra.mxu0 %v3564_v24 }
  0x28   :  { %v261_v22 = vld [vmem:[%s5321_s1 + $0x780] sm:$0xff]  ;;  %v3557_v26 = vcombine.high %v133_v20, %v137_v21  ;;  %2421 = vmatprep.subr.bf16.mxu1 %v3693_v19  ;;  %v3556_v32 = vcombine.low %v133_v20, %v137_v21  ;;  %v78_v21 = vld [vmem:[%s5321_s1 + $0x1c8] sm:$0xff] }
  0x29   :  { %v265_v23 = vld [vmem:[%s5321_s1 + $0x7a0] sm:$0xff]  ;;  %2422 = vmatpush2.bf16.msra.mxu1 %v3692_v25 }
  0x2a   :  { %v3685_v27 = vcombine.high %v261_v22, %v265_v23  ;;  %v125_v28 = vld [vmem:[%s5321_s1 + $0x340] sm:$0xff]  ;;  %2382 = vmatprep.subr.bf16.mxu0 %v3557_v26  ;;  %v3684_v33 = vcombine.low %v261_v22, %v265_v23  ;;  %v82_v22 = vld [vmem:[%s5321_s1 + $0x1e8] sm:$0xff] }
  0x2b   :  { %v129_v29 = vld [vmem:[%s5321_s1 + $0x360] sm:$0xff]  ;;  %2383 = vmatpush2.bf16.msra.mxu0 %v3556_v32  ;;  %v4129_v23 = vld.sshfl [vmem:[%s5320_s0 + $0x8] sm:$0x33 pattern:$0x76325410] }
  0x2c   :  { %v253_v30 = vld [vmem:[%s5321_s1 + $0x740] sm:$0xff]  ;;  %v3549_v35 = vcombine.high %v125_v28, %v129_v29  ;;  %2423 = vmatprep.subr.bf16.mxu1 %v3685_v27  ;;  %v3548_v41 = vcombine.low %v125_v28, %v129_v29  ;;  %v3503_v27 = vcombine.high %v78_v21, %v82_v22  ;;  %v70_v32 = vld [vmem:[%s5321_s1 + $0x188] sm:$0xff] }
  0x2d   :  { %v257_v31 = vld [vmem:[%s5321_s1 + $0x760] sm:$0xff]  ;;  %2424 = vmatpush2.bf16.msra.mxu1 %v3684_v33  ;;  %v74_v33 = vld [vmem:[%s5321_s1 + $0x1a8] sm:$0xff] }
  0x2e   :  { %v3677_v36 = vcombine.high %v253_v30, %v257_v31  ;;  %v117_v37 = vld [vmem:[%s5321_s1 + $0x300] sm:$0xff]  ;;  %2384 = vmatprep.subr.bf16.mxu0 %v3549_v35  ;;  %v3676_v42 = vcombine.low %v253_v30, %v257_v31  ;;  %v431_v30 = vcombine.high %v4129_v23, %v4129_v23  ;;  %v4141_v31 = vpack.c.bf16 %v3997_v63, %v3997_v63 }
  0x2f   :  { %v121_v38 = vld [vmem:[%s5321_s1 + $0x320] sm:$0xff]  ;;  %2385 = vmatpush2.bf16.msra.mxu0 %v3548_v41  ;;  %v4151_v35 = vpack.c.bf16 %v4008_v5, %v4008_v5 }
  0x30   :  { %v245_v39 = vld [vmem:[%s5321_s1 + $0x700] sm:$0xff]  ;;  %v3541_v43 = vcombine.high %v117_v37, %v121_v38  ;;  %2425 = vmatprep.subr.bf16.mxu1 %v3677_v36  ;;  %v3540_v50 = vcombine.low %v117_v37, %v121_v38 }
  0x31   :  { %v249_v40 = vld [vmem:[%s5321_s1 + $0x720] sm:$0xff]  ;;  %2426 = vmatpush2.bf16.msra.mxu1 %v3676_v42 }
  0x32   :  { %v3669_v45 = vcombine.high %v245_v39, %v249_v40  ;;  %v109_v46 = vld [vmem:[%s5321_s1 + $0x2c0] sm:$0xff]  ;;  %2386 = vmatprep.subr.bf16.mxu0 %v3541_v43  ;;  %v3668_v51 = vcombine.low %v245_v39, %v249_v40 }
  0x33   :  { %v113_v47 = vld [vmem:[%s5321_s1 + $0x2e0] sm:$0xff]  ;;  %2387 = vmatpush2.bf16.msra.mxu0 %v3540_v50 }
  0x34   :  { %v237_v48 = vld [vmem:[%s5321_s1 + $0x6c0] sm:$0xff]  ;;  %v3533_v52 = vcombine.high %v109_v46, %v113_v47  ;;  %2427 = vmatprep.subr.bf16.mxu1 %v3669_v45  ;;  %v3532_v59 = vcombine.low %v109_v46, %v113_v47 }
  0x35   :  { %v241_v49 = vld [vmem:[%s5321_s1 + $0x6e0] sm:$0xff]  ;;  %2428 = vmatpush2.bf16.msra.mxu1 %v3668_v51 }
  0x36   :  { %v3661_v54 = vcombine.high %v237_v48, %v241_v49  ;;  %v101_v55 = vld [vmem:[%s5321_s1 + $0x280] sm:$0xff]  ;;  %2388 = vmatprep.subr.bf16.mxu0 %v3533_v52  ;;  %v3660_v60 = vcombine.low %v237_v48, %v241_v49 }
  0x37   :  { %v105_v56 = vld [vmem:[%s5321_s1 + $0x2a0] sm:$0xff]  ;;  %2389 = vmatpush2.bf16.msra.mxu0 %v3532_v59 }
  0x38   :  { %v229_v57 = vld [vmem:[%s5321_s1 + $0x680] sm:$0xff]  ;;  %v3525_v61 = vcombine.high %v101_v55, %v105_v56  ;;  %2429 = vmatprep.subr.bf16.mxu1 %v3661_v54  ;;  %v3524_v4 = vcombine.low %v101_v55, %v105_v56 }
  0x39   :  { %v233_v58 = vld [vmem:[%s5321_s1 + $0x6a0] sm:$0xff]  ;;  %2430 = vmatpush2.bf16.msra.mxu1 %v3660_v60 }
  0x3a   :  { %v3653_v62 = vcombine.high %v229_v57, %v233_v58  ;;  %v93_v0 = vld [vmem:[%s5321_s1 + $0x240] sm:$0xff]  ;;  %2390 = vmatprep.subr.bf16.mxu0 %v3525_v61  ;;  %v3652_v6 = vcombine.low %v229_v57, %v233_v58 }
  0x3b   :  { %v97_v1 = vld [vmem:[%s5321_s1 + $0x260] sm:$0xff]  ;;  %2391 = vmatpush2.bf16.msra.mxu0 %v3524_v4 }
  0x3c   :  { %v221_v2 = vld [vmem:[%s5321_s1 + $0x640] sm:$0xff]  ;;  %v3517_v7 = vcombine.high %v93_v0, %v97_v1  ;;  %2431 = vmatprep.subr.bf16.mxu1 %v3653_v62  ;;  %v3516_v14 = vcombine.low %v93_v0, %v97_v1 }
  0x3d   :  { %v225_v3 = vld [vmem:[%s5321_s1 + $0x660] sm:$0xff]  ;;  %2432 = vmatpush2.bf16.msra.mxu1 %v3652_v6 }
  0x3e   :  { %v3645_v8 = vcombine.high %v221_v2, %v225_v3  ;;  %v85_v9 = vld [vmem:[%s5321_s1 + $0x200] sm:$0xff]  ;;  %2392 = vmatprep.subr.bf16.mxu0 %v3517_v7  ;;  %v3644_v15 = vcombine.low %v221_v2, %v225_v3 }
  0x3f   :  { %v89_v10 = vld [vmem:[%s5321_s1 + $0x220] sm:$0xff]  ;;  %2393 = vmatpush2.bf16.msra.mxu0 %v3516_v14 }
  0x40   :  { %v213_v12 = vld [vmem:[%s5321_s1 + $0x600] sm:$0xff]  ;;  %v3509_v17 = vcombine.high %v85_v9, %v89_v10  ;;  %2433 = vmatprep.subr.bf16.mxu1 %v3645_v8  ;;  %v3508_v24 = vcombine.low %v85_v9, %v89_v10 }
  0x41   :  { %v217_v13 = vld [vmem:[%s5321_s1 + $0x620] sm:$0xff]  ;;  %2434 = vmatpush2.bf16.msra.mxu1 %v3644_v15 }
  0x42   :  { %v3637_v18 = vcombine.high %v213_v12, %v217_v13  ;;  %v333_v19 = vld [vmem:[%s5321_s1 + $0x9c0] sm:$0xff]  ;;  %2394 = vmatprep.subr.bf16.mxu0 %v3509_v17  ;;  %v3636_v25 = vcombine.low %v213_v12, %v217_v13 }
  0x43   :  { %v337_v20 = vld [vmem:[%s5321_s1 + $0x9e0] sm:$0xff]  ;;  %2395 = vmatpush2.bf16.msra.mxu0 %v3508_v24 }
  0x44   :  { %v3757_v26 = vcombine.high %v333_v19, %v337_v20  ;;  %2435 = vmatprep.subr.bf16.mxu1 %v3637_v18  ;;  %v325_v28 = vld [vmem:[%s5321_s1 + $0x980] sm:$0xff]  ;;  %v3756_v36 = vcombine.low %v333_v19, %v337_v20 }
  0x45   :  { %v329_v29 = vld [vmem:[%s5321_s1 + $0x9a0] sm:$0xff] }
  0x46   :  { %12 = vsyncpa [#allocation3], 0  ;;  %2436 = vmatpush2.bf16.msra.mxu1 %v3636_v25  ;;  %2446 = vmatprep.subr.bf16.mxu0 %v3757_v26  ;;  %v3502_v37 = vcombine.low %v78_v21, %v82_v22  ;;  %v3749_v63 = vcombine.high %v325_v28, %v329_v29  ;;  %v3495_v38 = vcombine.high %v70_v32, %v74_v33  ;;  %v317_v39 = vld [vmem:[%s5321_s1 + $0x940] sm:$0xff]  ;;  %v62_v5 = vld [vmem:[%s5321_s1 + $0x148] sm:$0xff]  ;;  %vm2901_vm0 = vcmask 1041408   ;;  %s3861_s8 = smov [#allocation2]  }
  0x47   :  { %2487 = vmatprep.subr.bf16.mxu1 %v3503_v27  ;;  %v321_v40 = vld [vmem:[%s5321_s1 + $0x960] sm:$0xff]  ;;  %v4159_v41 = vpack.c.bf16 %v431_v30, %v431_v30  ;;  %2397 = vmatmul.mubr.bf16.vlgmr.msra.gmra.mxu0 %v4141_v31  ;;  %v66_v42 = vld [vmem:[%s5321_s1 + $0x168] sm:$0xff]  ;;  %v3748_v43 = vcombine.low %v325_v28, %v329_v29  ;;  %v3494_v45 = vcombine.low %v70_v32, %v74_v33  ;;  %vm2902_vm1 = vcmask 1043458   ;;  %s3425_s9 = sshll.u32 %s3861_s8, 4  ;;  %s3426_s9 = int_to_ptr.vmem [resolvable:$true] %s3425_s9 }
  0x48   :  { %2447 = vmatpush1.bf16.msra.mxu0 %v3756_v36  ;;  %v3741_v46 = vcombine.high %v317_v39, %v321_v40  ;;  %v3487_v47 = vcombine.high %v62_v5, %v66_v42  ;;  %v309_v48 = vld [vmem:[%s5321_s1 + $0x900] sm:$0xff]  ;;  %v54_v50 = vld [vmem:[%s5321_s1 + $0x108] sm:$0xff]  ;;  %v3740_v52 = vcombine.low %v317_v39, %v321_v40  ;;  %v3486_v54 = vcombine.low %v62_v5, %v66_v42  ;;  %vm2903_vm2 = vmor %vm2902_vm1, %vm2901_vm0  ;;  %s3837_s10 = scalar_lea.vmem %s3426_s9, 256  ;;  %p3842_p1 = scmp.lt.s32.totalorder %s3426_s9, %s3426_s9 }
  0x49   :  { %2438 = vmatmul.mubr.bf16.vlgmr.msra.gmra.mxu1 %v4151_v35  ;;  %2448 = vmatprep.subr.bf16.mxu0 %v3749_v63  ;;  %v313_v49 = vld [vmem:[%s5321_s1 + $0x920] sm:$0xff]  ;;  %v58_v51 = vld [vmem:[%s5321_s1 + $0x128] sm:$0xff]  ;;  %vm2904_vm3 = vcmask 1045508   ;;  %vm2930_vm4 = vcmask 844800   ;;  %vm2906_vm6 = vcmask 850950   ;;  %vm3007_vm8 = vcmask 850944   ;;  %p3838_p0 = scmp.ne.s32.totalorder %s3426_s9, %s3837_s10  ;;  %p3843_p2 = scmp.lt.s32.totalorder %s3837_s10, %s3837_s10 }
  0x4a   :  { %2488 = vmatpush1.bf16.msra.mxu1 %v3502_v37  ;;  %2478 = vmatprep.mubr.bf16.mxu0 %v4159_v41  ;;  %v3733_v55 = vcombine.high %v309_v48, %v313_v49  ;;  %v3479_v56 = vcombine.high %v54_v50, %v58_v51  ;;  %v301_v57 = vld [vmem:[%s5321_s1 + $0x8c0] sm:$0xff]  ;;  %v46_v59 = vld [vmem:[%s5321_s1 + $0xc8] sm:$0xff]  ;;  %v3732_v61 = vcombine.low %v309_v48, %v313_v49  ;;  %vm2905_vm5 = vmor %vm2904_vm3, %vm2903_vm2  ;;  %vm3414_vm9 = vcmp.lt.s32.totalorder %v411_v34, 1000 }
  0x4b   :  { %2489 = vmatprep.subr.bf16.mxu1 %v3495_v38  ;;  %2519 = vmatprep.mubr.bf16.mxu1 %v4016_v11  ;;  %v305_v58 = vld [vmem:[%s5321_s1 + $0x8e0] sm:$0xff]  ;;  %v50_v60 = vld [vmem:[%s5321_s1 + $0xe8] sm:$0xff]  ;;  %v3478_v62 = vcombine.low %v54_v50, %v58_v51  ;;  %vm5180_vm7 = vmor %vm2906_vm6, %vm2905_vm5  ;;  %p3844_p3 = por %p3843_p2, %p3842_p1 }
  0x4c   :  { %2449 = vmatpush1.bf16.msra.mxu0 %v3748_v43  ;;  %v3725_v0 = vcombine.high %v301_v57, %v305_v58  ;;  %v3471_v1 = vcombine.high %v46_v59, %v50_v60  ;;  %v293_v2 = vld [vmem:[%s5321_s1 + $0x880] sm:$0xff]  ;;  %v38_v4 = vld [vmem:[%s5321_s1 + $0x88] sm:$0xff]  ;;  %v3724_v7 = vcombine.low %v301_v57, %v305_v58  ;;  %v3470_v8 = vcombine.low %v46_v59, %v50_v60 }
  0x4d   :  { %2450 = vmatprep.subr.bf16.mxu0 %v3741_v46  ;;  %v297_v3 = vld [vmem:[%s5321_s1 + $0x8a0] sm:$0xff]  ;;  %v42_v6 = vld [vmem:[%s5321_s1 + $0xa8] sm:$0xff]  ;;  %p3845_p4 = pnand %p3844_p3, %p3838_p0 }
  0x4e   :  { %2490 = vmatpush1.bf16.msra.mxu1 %v3494_v45  ;;  %v3717_v9 = vcombine.high %v293_v2, %v297_v3  ;;  %v3463_v10 = vcombine.high %v38_v4, %v42_v6  ;;  %v285_v12 = vld [vmem:[%s5321_s1 + $0x840] sm:$0xff]  ;;  %v30_v14 = vld [vmem:[%s5321_s1 + $0x48] sm:$0xff]  ;;  %v3716_v17 = vcombine.low %v293_v2, %v297_v3  ;;  %v3462_v18 = vcombine.low %v38_v4, %v42_v6 }
  0x4f   :  { %2491 = vmatprep.subr.bf16.mxu1 %v3487_v47  ;;  %v289_v13 = vld [vmem:[%s5321_s1 + $0x860] sm:$0xff]  ;;  %v34_v15 = vld [vmem:[%s5321_s1 + $0x68] sm:$0xff] }
  0x50   :  { %2451 = vmatpush1.bf16.msra.mxu0 %v3740_v52  ;;  %v3709_v19 = vcombine.high %v285_v12, %v289_v13  ;;  %v3455_v20 = vcombine.high %v30_v14, %v34_v15  ;;  %v277_v21 = vld [vmem:[%s5321_s1 + $0x800] sm:$0xff]  ;;  %v22_v24 = vld [vmem:[%s5321_s1 + $0x8] sm:$0xff]  ;;  %v3708_v26 = vcombine.low %v285_v12, %v289_v13  ;;  %v3454_v27 = vcombine.low %v30_v14, %v34_v15 }
  0x51   :  { %2452 = vmatprep.subr.bf16.mxu0 %v3733_v55  ;;  %v281_v22 = vld [vmem:[%s5321_s1 + $0x820] sm:$0xff]  ;;  %v26_v25 = vld [vmem:[%s5321_s1 + $0x28] sm:$0xff] }
  0x52   :  { %2492 = vmatpush1.bf16.msra.mxu1 %v3486_v54  ;;  %v3701_v28 = vcombine.high %v277_v21, %v281_v22  ;;  %v3447_v29 = vcombine.high %v22_v24, %v26_v25  ;;  %v397_v30 = vld [vmem:[%s5321_s1 + $0xbc0] sm:$0xff]  ;;  %v142_v33 = vld [vmem:[%s5321_s1 + $0x3c8] sm:$0xff]  ;;  %v3700_v37 = vcombine.low %v277_v21, %v281_v22  ;;  %v3446_v63 = vcombine.low %v22_v24, %v26_v25 }
  0x53   :  { %2493 = vmatprep.subr.bf16.mxu1 %v3479_v56  ;;  %v401_v32 = vld [vmem:[%s5321_s1 + $0xbe0] sm:$0xff]  ;;  %v146_v36 = vld [vmem:[%s5321_s1 + $0x3e8] sm:$0xff] }
  0x54   :  { %2453 = vmatpush1.bf16.msra.mxu0 %v3732_v61  ;;  %v3821_v38 = vcombine.high %v397_v30, %v401_v32  ;;  %v3567_v39 = vcombine.high %v142_v33, %v146_v36  ;;  %v389_v40 = vld [vmem:[%s5321_s1 + $0xb80] sm:$0xff]  ;;  %v134_v42 = vld [vmem:[%s5321_s1 + $0x388] sm:$0xff]  ;;  %v3820_v45 = vcombine.low %v397_v30, %v401_v32  ;;  %v3566_v46 = vcombine.low %v142_v33, %v146_v36 }
  0x55   :  { %2454 = vmatprep.subr.bf16.mxu0 %v3725_v0  ;;  %v393_v5 = vld [vmem:[%s5321_s1 + $0xba0] sm:$0xff]  ;;  %v138_v43 = vld [vmem:[%s5321_s1 + $0x3a8] sm:$0xff] }
  0x56   :  { %2494 = vmatpush1.bf16.msra.mxu1 %v3478_v62  ;;  %v3813_v47 = vcombine.high %v389_v40, %v393_v5  ;;  %v3559_v48 = vcombine.high %v134_v42, %v138_v43  ;;  %v381_v49 = vld [vmem:[%s5321_s1 + $0xb40] sm:$0xff]  ;;  %v126_v51 = vld [vmem:[%s5321_s1 + $0x348] sm:$0xff]  ;;  %v3812_v54 = vcombine.low %v389_v40, %v393_v5  ;;  %v3558_v55 = vcombine.low %v134_v42, %v138_v43 }
  0x57   :  { %2495 = vmatprep.subr.bf16.mxu1 %v3471_v1  ;;  %v385_v50 = vld [vmem:[%s5321_s1 + $0xb60] sm:$0xff]  ;;  %v130_v52 = vld [vmem:[%s5321_s1 + $0x368] sm:$0xff] }
  0x58   :  { %2455 = vmatpush1.bf16.msra.mxu0 %v3724_v7  ;;  %v3805_v56 = vcombine.high %v381_v49, %v385_v50  ;;  %v3551_v57 = vcombine.high %v126_v51, %v130_v52  ;;  %v373_v58 = vld [vmem:[%s5321_s1 + $0xb00] sm:$0xff]  ;;  %v118_v60 = vld [vmem:[%s5321_s1 + $0x308] sm:$0xff]  ;;  %v3804_v62 = vcombine.low %v381_v49, %v385_v50  ;;  %v3550_v0 = vcombine.low %v126_v51, %v130_v52 }
  0x59   :  { %2456 = vmatprep.subr.bf16.mxu0 %v3717_v9  ;;  %v377_v59 = vld [vmem:[%s5321_s1 + $0xb20] sm:$0xff]  ;;  %v122_v61 = vld [vmem:[%s5321_s1 + $0x328] sm:$0xff]  ;;  %v4347_v52 = vpack.c.bf16 %v4129_v23, %v4129_v23 }
  0x5a   :  { %2496 = vmatpush1.bf16.msra.mxu1 %v3470_v8  ;;  %v3797_v1 = vcombine.high %v373_v58, %v377_v59  ;;  %v3543_v2 = vcombine.high %v118_v60, %v122_v61  ;;  %v365_v3 = vld [vmem:[%s5321_s1 + $0xac0] sm:$0xff]  ;;  %v110_v6 = vld [vmem:[%s5321_s1 + $0x2c8] sm:$0xff]  ;;  %v3796_v8 = vcombine.low %v373_v58, %v377_v59  ;;  %v3542_v9 = vcombine.low %v118_v60, %v122_v61 }
  0x5b   :  { %2497 = vmatprep.subr.bf16.mxu1 %v3463_v10  ;;  %v369_v4 = vld [vmem:[%s5321_s1 + $0xae0] sm:$0xff]  ;;  %v114_v7 = vld [vmem:[%s5321_s1 + $0x2e8] sm:$0xff] }
  0x5c   :  { %2457 = vmatpush1.bf16.msra.mxu0 %v3716_v17  ;;  %v3789_v10 = vcombine.high %v365_v3, %v369_v4  ;;  %v3535_v12 = vcombine.high %v110_v6, %v114_v7  ;;  %v357_v13 = vld [vmem:[%s5321_s1 + $0xa80] sm:$0xff]  ;;  %v102_v15 = vld [vmem:[%s5321_s1 + $0x288] sm:$0xff] }
  0x5d   :  { %2458 = vmatprep.subr.bf16.mxu0 %v3709_v19  ;;  %v361_v14 = vld [vmem:[%s5321_s1 + $0xaa0] sm:$0xff]  ;;  %v106_v17 = vld [vmem:[%s5321_s1 + $0x2a8] sm:$0xff]  ;;  %v3534_v19 = vcombine.low %v110_v6, %v114_v7 }
  0x5e   :  { %2498 = vmatpush1.bf16.msra.mxu1 %v3462_v18  ;;  %v3788_v18 = vcombine.low %v365_v3, %v369_v4  ;;  %v3527_v21 = vcombine.high %v102_v15, %v106_v17  ;;  %v349_v22 = vld [vmem:[%s5321_s1 + $0xa40] sm:$0xff]  ;;  %v94_v25 = vld [vmem:[%s5321_s1 + $0x248] sm:$0xff] }
  0x5f   :  { %2499 = vmatprep.subr.bf16.mxu1 %v3455_v20  ;;  %v3781_v20 = vcombine.high %v357_v13, %v361_v14  ;;  %v353_v24 = vld [vmem:[%s5321_s1 + $0xa60] sm:$0xff]  ;;  %v86_v36 = vld [vmem:[%s5321_s1 + $0x208] sm:$0xff] }
  0x60   :  { %2459 = vmatpush1.bf16.msra.mxu0 %v3708_v26  ;;  %v98_v26 = vld [vmem:[%s5321_s1 + $0x268] sm:$0xff]  ;;  %v341_v32 = vld [vmem:[%s5321_s1 + $0xa00] sm:$0xff] }
  0x61   :  { %2460 = vmatprep.subr.bf16.mxu0 %v3701_v28  ;;  %v3526_v28 = vcombine.low %v102_v15, %v106_v17  ;;  %v3519_v30 = vcombine.high %v94_v25, %v98_v26  ;;  %v345_v33 = vld [vmem:[%s5321_s1 + $0xa20] sm:$0xff]  ;;  %v206_v5 = vld [vmem:[%s5321_s1 + $0x5c8] sm:$0xff] }
  0x62   :  { %2500 = vmatpush1.bf16.msra.mxu1 %v3454_v27  ;;  %v3780_v27 = vcombine.low %v357_v13, %v361_v14  ;;  %v210_v42 = vld [vmem:[%s5321_s1 + $0x5e8] sm:$0xff] }
  0x63   :  { %2501 = vmatprep.subr.bf16.mxu1 %v3447_v29  ;;  %v3773_v29 = vcombine.high %v349_v22, %v353_v24  ;;  %v334_v43 = vld [vmem:[%s5321_s1 + $0x9c8] sm:$0xff] }
  0x64   :  { %2461 = vmatpush1.bf16.msra.mxu0 %v3700_v37  ;;  %v90_v37 = vld [vmem:[%s5321_s1 + $0x228] sm:$0xff] }
  0x65   :  { %2462 = vmatprep.subr.bf16.mxu0 %v3821_v38  ;;  %v3518_v38 = vcombine.low %v94_v25, %v98_v26  ;;  %v3511_v40 = vcombine.high %v86_v36, %v90_v37  ;;  %v198_v50 = vld [vmem:[%s5321_s1 + $0x588] sm:$0xff] }
  0x66   :  { %2502 = vmatpush1.bf16.msra.mxu1 %v3446_v63  ;;  %v3772_v63 = vcombine.low %v349_v22, %v353_v24  ;;  %v202_v51 = vld [vmem:[%s5321_s1 + $0x5a8] sm:$0xff] }
  0x67   :  { %2503 = vmatprep.subr.bf16.mxu1 %v3567_v39  ;;  %v3765_v39 = vcombine.high %v341_v32, %v345_v33  ;;  %v3623_v58 = vcombine.high %v198_v50, %v202_v51  ;;  %v190_v23 = vld [vmem:[%s5321_s1 + $0x548] sm:$0xff] }
  0x68   :  { %2463 = vmatpush2.bf16.msra.mxu0 %v3820_v45  ;;  %v338_v45 = vld [vmem:[%s5321_s1 + $0x9e8] sm:$0xff] }
  0x69   :  { %2464 = vmatprep.subr.bf16.mxu0 %v3813_v47  ;;  %v3510_v47 = vcombine.low %v86_v36, %v90_v37  ;;  %v3759_v49 = vcombine.high %v334_v43, %v338_v45  ;;  %v194_v60 = vld [vmem:[%s5321_s1 + $0x568] sm:$0xff] }
  0x6a   :  { %2504 = vmatpush2.bf16.msra.mxu1 %v3566_v46  ;;  %v3764_v46 = vcombine.low %v341_v32, %v345_v33  ;;  %v318_v61 = vld [vmem:[%s5321_s1 + $0x948] sm:$0xff] }
  0x6b   :  { %2505 = vmatprep.subr.bf16.mxu1 %v3559_v48  ;;  %v3631_v48 = vcombine.high %v206_v5, %v210_v42  ;;  %v182_v4 = vld [vmem:[%s5321_s1 + $0x508] sm:$0xff] }
  0x6c   :  { %2465 = vmatpush2.bf16.msra.mxu0 %v3812_v54  ;;  %v326_v54 = vld [vmem:[%s5321_s1 + $0x988] sm:$0xff] }
  0x6d   :  { %2466 = vmatprep.subr.bf16.mxu0 %v3805_v56  ;;  %v3630_v56 = vcombine.low %v206_v5, %v210_v42  ;;  %v186_v6 = vld [vmem:[%s5321_s1 + $0x528] sm:$0xff] }
  0x6e   :  { %2506 = vmatpush2.bf16.msra.mxu1 %v3558_v55  ;;  %v330_v55 = vld [vmem:[%s5321_s1 + $0x9a8] sm:$0xff] }
  0x6f   :  { %2507 = vmatprep.subr.bf16.mxu1 %v3551_v57  ;;  %v3758_v57 = vcombine.low %v334_v43, %v338_v45  ;;  %v3751_v59 = vcombine.high %v326_v54, %v330_v55  ;;  %v310_v7 = vld [vmem:[%s5321_s1 + $0x908] sm:$0xff] }
  0x70   :  { %2467 = vmatpush2.bf16.msra.mxu0 %v3804_v62  ;;  %v322_v62 = vld [vmem:[%s5321_s1 + $0x968] sm:$0xff] }
  0x71   :  { %2468 = vmatprep.subr.bf16.mxu0 %v3797_v1  ;;  %v3750_v1 = vcombine.low %v326_v54, %v330_v55  ;;  %v3743_v3 = vcombine.high %v318_v61, %v322_v62  ;;  %v174_v14 = vld [vmem:[%s5321_s1 + $0x4c8] sm:$0xff] }
  0x72   :  { %2508 = vmatpush2.bf16.msra.mxu1 %v3550_v0  ;;  %v3622_v0 = vcombine.low %v198_v50, %v202_v51  ;;  %v178_v15 = vld [vmem:[%s5321_s1 + $0x4e8] sm:$0xff] }
  0x73   :  { %2509 = vmatprep.subr.bf16.mxu1 %v3543_v2  ;;  %v3615_v2 = vcombine.high %v190_v23, %v194_v60  ;;  %v302_v17 = vld [vmem:[%s5321_s1 + $0x8c8] sm:$0xff] }
  0x74   :  { %2469 = vmatpush2.bf16.msra.mxu0 %v3796_v8  ;;  %v314_v8 = vld [vmem:[%s5321_s1 + $0x928] sm:$0xff] }
  0x75   :  { %2470 = vmatprep.subr.bf16.mxu0 %v3789_v10  ;;  %v3742_v10 = vcombine.low %v318_v61, %v322_v62  ;;  %v3735_v13 = vcombine.high %v310_v7, %v314_v8  ;;  %v166_v24 = vld [vmem:[%s5321_s1 + $0x488] sm:$0xff] }
  0x76   :  { %2510 = vmatpush2.bf16.msra.mxu1 %v3542_v9  ;;  %v3614_v9 = vcombine.low %v190_v23, %v194_v60  ;;  %v170_v25 = vld [vmem:[%s5321_s1 + $0x4a8] sm:$0xff] }
  0x77   :  { %2511 = vmatprep.subr.bf16.mxu1 %v3535_v12  ;;  %v3607_v12 = vcombine.high %v182_v4, %v186_v6  ;;  %v294_v26 = vld [vmem:[%s5321_s1 + $0x888] sm:$0xff] }
  0x78   :  { %2471 = vmatpush2.bf16.msra.mxu0 %v3788_v18  ;;  %v306_v18 = vld [vmem:[%s5321_s1 + $0x8e8] sm:$0xff] }
  0x79   :  { %2472 = vmatprep.subr.bf16.mxu0 %v3781_v20  ;;  %v3734_v20 = vcombine.low %v310_v7, %v314_v8  ;;  %v3727_v22 = vcombine.high %v302_v17, %v306_v18  ;;  %v158_v33 = vld [vmem:[%s5321_s1 + $0x448] sm:$0xff] }
  0x7a   :  { %2512 = vmatpush2.bf16.msra.mxu1 %v3534_v19  ;;  %v3606_v19 = vcombine.low %v182_v4, %v186_v6  ;;  %v162_v36 = vld [vmem:[%s5321_s1 + $0x468] sm:$0xff] }
  0x7b   :  { %2513 = vmatprep.subr.bf16.mxu1 %v3527_v21  ;;  %v3599_v21 = vcombine.high %v174_v14, %v178_v15  ;;  %v286_v37 = vld [vmem:[%s5321_s1 + $0x848] sm:$0xff] }
  0x7c   :  { %2473 = vmatpush2.bf16.msra.mxu0 %v3780_v27  ;;  %v298_v27 = vld [vmem:[%s5321_s1 + $0x8a8] sm:$0xff] }
  0x7d   :  { %2474 = vmatprep.subr.bf16.mxu0 %v3773_v29  ;;  %v3726_v29 = vcombine.low %v302_v17, %v306_v18  ;;  %v3719_v32 = vcombine.high %v294_v26, %v298_v27  ;;  %v150_v42 = vld [vmem:[%s5321_s1 + $0x408] sm:$0xff] }
  0x7e   :  { %2514 = vmatpush2.bf16.msra.mxu1 %v3526_v28  ;;  %v3598_v28 = vcombine.low %v174_v14, %v178_v15  ;;  %v154_v43 = vld [vmem:[%s5321_s1 + $0x428] sm:$0xff] }
  0x7f   :  { %2515 = vmatprep.subr.bf16.mxu1 %v3519_v30  ;;  %v3591_v30 = vcombine.high %v166_v24, %v170_v25  ;;  %v278_v45 = vld [vmem:[%s5321_s1 + $0x808] sm:$0xff] }
  0x80   :  { %2475 = vmatpush2.bf16.msra.mxu0 %v3772_v63  ;;  %v290_v63 = vld [vmem:[%s5321_s1 + $0x868] sm:$0xff] }
  0x81   :  { %2476 = vmatprep.subr.bf16.mxu0 %v3765_v39  ;;  %v3718_v39 = vcombine.low %v294_v26, %v298_v27  ;;  %v3711_v5 = vcombine.high %v286_v37, %v290_v63  ;;  %v270_v51 = vld [vmem:[%s5321_s1 + $0x7c8] sm:$0xff] }
  0x82   :  { %2516 = vmatpush2.bf16.msra.mxu1 %v3518_v38  ;;  %v3590_v38 = vcombine.low %v166_v24, %v170_v25  ;;  %v274_v54 = vld [vmem:[%s5321_s1 + $0x7e8] sm:$0xff] }
  0x83   :  { %2517 = vmatprep.subr.bf16.mxu1 %v3511_v40  ;;  %v3583_v40 = vcombine.high %v158_v33, %v162_v36  ;;  %v398_v55 = vld [vmem:[%s5321_s1 + $0xbc8] sm:$0xff] }
  0x84   :  { %2477 = vmatpush2.bf16.msra.mxu0 %v3764_v46  ;;  %v282_v46 = vld [vmem:[%s5321_s1 + $0x828] sm:$0xff] }
  0x85   :  { %2528 = vmatprep.subr.bf16.mxu0 %v3631_v48  ;;  %v3710_v48 = vcombine.low %v286_v37, %v290_v63  ;;  %v3703_v50 = vcombine.high %v278_v45, %v282_v46  ;;  %v262_v60 = vld [vmem:[%s5321_s1 + $0x788] sm:$0xff] }
  0x86   :  { %2518 = vmatpush2.bf16.msra.mxu1 %v3510_v47  ;;  %v3582_v47 = vcombine.low %v158_v33, %v162_v36  ;;  %v266_v61 = vld [vmem:[%s5321_s1 + $0x7a8] sm:$0xff] }
  0x87   :  { %2569 = vmatprep.subr.bf16.mxu1 %v3759_v49  ;;  %2479 = vmatmul.mubr.bf16.vlgmr.msra.gmra.mxu0 %v4347_v52  ;;  %v3575_v49 = vcombine.high %v150_v42, %v154_v43  ;;  %v390_v62 = vld [vmem:[%s5321_s1 + $0xb88] sm:$0xff] }
  0x88   :  { %2529 = vmatpush1.bf16.msra.mxu0 %v3630_v56  ;;  %2560 = vmatprep.mubr.bf16.mxu0 %v4027_v16  ;;  %v402_v56 = vld [vmem:[%s5321_s1 + $0xbe8] sm:$0xff] }
  0x89   :  { %2520 = vmatmul.mubr.bf16.vlgmr.msra.gmra.mxu1 %v4141_v31  ;;  %2530 = vmatprep.subr.bf16.mxu0 %v3623_v58  ;;  %v3702_v58 = vcombine.low %v278_v45, %v282_v46  ;;  %v3823_v23 = vcombine.high %v398_v55, %v402_v56  ;;  %v254_v6 = vld [vmem:[%s5321_s1 + $0x748] sm:$0xff] }
  0x8a   :  { %2570 = vmatpush1.bf16.msra.mxu1 %v3758_v57  ;;  %2601 = vmatprep.mubr.bf16.mxu1 %v4159_v41  ;;  %v3574_v57 = vcombine.low %v150_v42, %v154_v43  ;;  %v258_v7 = vld [vmem:[%s5321_s1 + $0x768] sm:$0xff] }
  0x8b   :  { %2571 = vmatprep.subr.bf16.mxu1 %v3751_v59  ;;  %v3695_v59 = vcombine.high %v270_v51, %v274_v54  ;;  %v382_v8 = vld [vmem:[%s5321_s1 + $0xb48] sm:$0xff] }
  0x8c   :  { %2531 = vmatpush1.bf16.msra.mxu0 %v3622_v0  ;;  %v394_v0 = vld [vmem:[%s5321_s1 + $0xba8] sm:$0xff] }
  0x8d   :  { %2532 = vmatprep.subr.bf16.mxu0 %v3615_v2  ;;  %v3822_v2 = vcombine.low %v398_v55, %v402_v56  ;;  %v3815_v4 = vcombine.high %v390_v62, %v394_v0  ;;  %v246_v15 = vld [vmem:[%s5321_s1 + $0x708] sm:$0xff] }
  0x8e   :  { %2572 = vmatpush1.bf16.msra.mxu1 %v3750_v1  ;;  %v3694_v1 = vcombine.low %v270_v51, %v274_v54  ;;  %v250_v17 = vld [vmem:[%s5321_s1 + $0x728] sm:$0xff] }
  0x8f   :  { %2573 = vmatprep.subr.bf16.mxu1 %v3743_v3  ;;  %v3687_v3 = vcombine.high %v262_v60, %v266_v61  ;;  %v374_v18 = vld [vmem:[%s5321_s1 + $0xb08] sm:$0xff] }
  0x90   :  { %2533 = vmatpush1.bf16.msra.mxu0 %v3614_v9  ;;  %v386_v9 = vld [vmem:[%s5321_s1 + $0xb68] sm:$0xff] }
  0x91   :  { %2534 = vmatprep.subr.bf16.mxu0 %v3607_v12  ;;  %v3814_v12 = vcombine.low %v390_v62, %v394_v0  ;;  %v3807_v14 = vcombine.high %v382_v8, %v386_v9  ;;  %v238_v25 = vld [vmem:[%s5321_s1 + $0x6c8] sm:$0xff]  ;;  %v83_v62 = vld [vmem:[%s5321_s1 + $0x1f0] sm:$0xff] }
  0x92   :  { %2574 = vmatpush1.bf16.msra.mxu1 %v3742_v10  ;;  %v3686_v10 = vcombine.low %v262_v60, %v266_v61  ;;  %v242_v26 = vld [vmem:[%s5321_s1 + $0x6e8] sm:$0xff]  ;;  %v79_v61 = vld [vmem:[%s5321_s1 + $0x1d0] sm:$0xff] }
  0x93   :  { %2575 = vmatprep.subr.bf16.mxu1 %v3735_v13  ;;  %v3679_v13 = vcombine.high %v254_v6, %v258_v7  ;;  %v366_v27 = vld [vmem:[%s5321_s1 + $0xac8] sm:$0xff]  ;;  %v207_v0 = vld [vmem:[%s5321_s1 + $0x5d0] sm:$0xff] }
  0x94   :  { %2535 = vmatpush1.bf16.msra.mxu0 %v3606_v19  ;;  %v378_v19 = vld [vmem:[%s5321_s1 + $0xb28] sm:$0xff] }
  0x95   :  { %2536 = vmatprep.subr.bf16.mxu0 %v3599_v21  ;;  %v3806_v21 = vcombine.low %v382_v8, %v386_v9  ;;  %v3799_v24 = vcombine.high %v374_v18, %v378_v19  ;;  %v230_v36 = vld [vmem:[%s5321_s1 + $0x688] sm:$0xff]  ;;  %v75_v8 = vld [vmem:[%s5321_s1 + $0x1b0] sm:$0xff] }
  0x96   :  { %2576 = vmatpush1.bf16.msra.mxu1 %v3734_v20  ;;  %v3678_v20 = vcombine.low %v254_v6, %v258_v7  ;;  %v234_v37 = vld [vmem:[%s5321_s1 + $0x6a8] sm:$0xff]  ;;  %v71_v7 = vld [vmem:[%s5321_s1 + $0x190] sm:$0xff] }
  0x97   :  { %2577 = vmatprep.subr.bf16.mxu1 %v3727_v22  ;;  %v3671_v22 = vcombine.high %v246_v15, %v250_v17  ;;  %v358_v63 = vld [vmem:[%s5321_s1 + $0xa88] sm:$0xff]  ;;  %v199_v9 = vld [vmem:[%s5321_s1 + $0x590] sm:$0xff] }
  0x98   :  { %2537 = vmatpush1.bf16.msra.mxu0 %v3598_v28  ;;  %v370_v28 = vld [vmem:[%s5321_s1 + $0xae8] sm:$0xff] }
  0x99   :  { %2538 = vmatprep.subr.bf16.mxu0 %v3591_v30  ;;  %v3798_v30 = vcombine.low %v374_v18, %v378_v19  ;;  %v3791_v33 = vcombine.high %v366_v27, %v370_v28  ;;  %v222_v43 = vld [vmem:[%s5321_s1 + $0x648] sm:$0xff]  ;;  %v67_v18 = vld [vmem:[%s5321_s1 + $0x170] sm:$0xff] }
  0x9a   :  { %2578 = vmatpush1.bf16.msra.mxu1 %v3726_v29  ;;  %v3670_v29 = vcombine.low %v246_v15, %v250_v17  ;;  %v226_v45 = vld [vmem:[%s5321_s1 + $0x668] sm:$0xff]  ;;  %v63_v17 = vld [vmem:[%s5321_s1 + $0x150] sm:$0xff] }
  0x9b   :  { %2579 = vmatprep.subr.bf16.mxu1 %v3719_v32  ;;  %v3663_v32 = vcombine.high %v238_v25, %v242_v26  ;;  %v350_v46 = vld [vmem:[%s5321_s1 + $0xa48] sm:$0xff]  ;;  %v191_v19 = vld [vmem:[%s5321_s1 + $0x550] sm:$0xff] }
  0x9c   :  { %2539 = vmatpush1.bf16.msra.mxu0 %v3590_v38  ;;  %v362_v38 = vld [vmem:[%s5321_s1 + $0xaa8] sm:$0xff] }
  0x9d   :  { %2540 = vmatprep.subr.bf16.mxu0 %v3583_v40  ;;  %v3790_v40 = vcombine.low %v366_v27, %v370_v28  ;;  %v3783_v42 = vcombine.high %v358_v63, %v362_v38  ;;  %v214_v54 = vld [vmem:[%s5321_s1 + $0x608] sm:$0xff]  ;;  %v59_v27 = vld [vmem:[%s5321_s1 + $0x130] sm:$0xff] }
  0x9e   :  { %2580 = vmatpush1.bf16.msra.mxu1 %v3718_v39  ;;  %v3662_v39 = vcombine.low %v238_v25, %v242_v26  ;;  %v218_v55 = vld [vmem:[%s5321_s1 + $0x628] sm:$0xff]  ;;  %v55_v26 = vld [vmem:[%s5321_s1 + $0x110] sm:$0xff] }
  0x9f   :  { %2581 = vmatprep.subr.bf16.mxu1 %v3711_v5  ;;  %v3655_v5 = vcombine.high %v230_v36, %v234_v37  ;;  %v342_v56 = vld [vmem:[%s5321_s1 + $0xa08] sm:$0xff]  ;;  %v183_v28 = vld [vmem:[%s5321_s1 + $0x510] sm:$0xff] }
  0xa0   :  { %2541 = vmatpush1.bf16.msra.mxu0 %v3582_v47  ;;  %v354_v47 = vld [vmem:[%s5321_s1 + $0xa68] sm:$0xff] }
  0xa1   :  { %2542 = vmatprep.subr.bf16.mxu0 %v3575_v49  ;;  %v3782_v49 = vcombine.low %v358_v63, %v362_v38  ;;  %v3775_v51 = vcombine.high %v350_v46, %v354_v47  ;;  %v51_v63 = vld [vmem:[%s5321_s1 + $0xf0] sm:$0xff] }
  0xa2   :  { %2582 = vmatpush1.bf16.msra.mxu1 %v3710_v48  ;;  %v3654_v48 = vcombine.low %v230_v36, %v234_v37  ;;  %v47_v37 = vld [vmem:[%s5321_s1 + $0xd0] sm:$0xff] }
  0xa3   :  { %2583 = vmatprep.subr.bf16.mxu1 %v3703_v50  ;;  %v3647_v50 = vcombine.high %v222_v43, %v226_v45  ;;  %v175_v38 = vld [vmem:[%s5321_s1 + $0x4d0] sm:$0xff] }
  0xa4   :  { %2543 = vmatpush1.bf16.msra.mxu0 %v3574_v57  ;;  %v346_v57 = vld [vmem:[%s5321_s1 + $0xa28] sm:$0xff] }
  0xa5   :  { %2544 = vmatprep.subr.bf16.mxu0 %v3695_v59  ;;  %v3774_v59 = vcombine.low %v350_v46, %v354_v47  ;;  %v3767_v60 = vcombine.high %v342_v56, %v346_v57  ;;  %v43_v46 = vld [vmem:[%s5321_s1 + $0xb0] sm:$0xff] }
  0xa6   :  { %2584 = vmatpush1.bf16.msra.mxu1 %v3702_v58  ;;  %v3646_v58 = vcombine.low %v222_v43, %v226_v45  ;;  %v39_v45 = vld [vmem:[%s5321_s1 + $0x90] sm:$0xff] }
  0xa7   :  { %2585 = vmatprep.subr.bf16.mxu1 %v3823_v23  ;;  %v3639_v23 = vcombine.high %v214_v54, %v218_v55  ;;  %v167_v47 = vld [vmem:[%s5321_s1 + $0x490] sm:$0xff] }
  0xa8   :  { %2545 = vmatpush2.bf16.msra.mxu0 %v3694_v1  ;;  %v211_v1 = vld [vmem:[%s5321_s1 + $0x5f0] sm:$0xff] }
  0xa9   :  { %2546 = vmatprep.subr.bf16.mxu0 %v3687_v3  ;;  %v3766_v3 = vcombine.low %v342_v56, %v346_v57  ;;  %v3633_v6 = vcombine.high %v207_v0, %v211_v1  ;;  %v35_v56 = vld [vmem:[%s5321_s1 + $0x70] sm:$0xff] }
  0xaa   :  { %2586 = vmatpush2.bf16.msra.mxu1 %v3822_v2  ;;  %v3638_v2 = vcombine.low %v214_v54, %v218_v55  ;;  %v31_v55 = vld [vmem:[%s5321_s1 + $0x50] sm:$0xff] }
  0xab   :  { %2587 = vmatprep.subr.bf16.mxu1 %v3815_v4  ;;  %v3505_v4 = vcombine.high %v79_v61, %v83_v62  ;;  %v159_v57 = vld [vmem:[%s5321_s1 + $0x450] sm:$0xff] }
  0xac   :  { %2547 = vmatpush2.bf16.msra.mxu0 %v3686_v10  ;;  %v203_v10 = vld [vmem:[%s5321_s1 + $0x5b0] sm:$0xff] }
  0xad   :  { %2548 = vmatprep.subr.bf16.mxu0 %v3679_v13  ;;  %v3632_v13 = vcombine.low %v207_v0, %v211_v1  ;;  %v3625_v15 = vcombine.high %v199_v9, %v203_v10  ;;  %v27_v0 = vld [vmem:[%s5321_s1 + $0x30] sm:$0xff] }
  0xae   :  { %2588 = vmatpush2.bf16.msra.mxu1 %v3814_v12  ;;  %v3504_v12 = vcombine.low %v79_v61, %v83_v62  ;;  %v23_v62 = vld [vmem:[%s5321_s1 + $0x10] sm:$0xff] }
  0xaf   :  { %2589 = vmatprep.subr.bf16.mxu1 %v3807_v14  ;;  %v3497_v14 = vcombine.high %v71_v7, %v75_v8  ;;  %v151_v1 = vld [vmem:[%s5321_s1 + $0x410] sm:$0xff] }
  0xb0   :  { %2549 = vmatpush2.bf16.msra.mxu0 %v3678_v20  ;;  %v195_v20 = vld [vmem:[%s5321_s1 + $0x570] sm:$0xff] }
  0xb1   :  { %2550 = vmatprep.subr.bf16.mxu0 %v3671_v22  ;;  %v3624_v22 = vcombine.low %v199_v9, %v203_v10  ;;  %v3617_v25 = vcombine.high %v191_v19, %v195_v20  ;;  %v147_v9 = vld [vmem:[%s5321_s1 + $0x3f0] sm:$0xff] }
  0xb2   :  { %2590 = vmatpush2.bf16.msra.mxu1 %v3806_v21  ;;  %v3496_v21 = vcombine.low %v71_v7, %v75_v8  ;;  %v143_v8 = vld [vmem:[%s5321_s1 + $0x3d0] sm:$0xff] }
  0xb3   :  { %2591 = vmatprep.subr.bf16.mxu1 %v3799_v24  ;;  %v3489_v24 = vcombine.high %v63_v17, %v67_v18  ;;  %v271_v10 = vld [vmem:[%s5321_s1 + $0x7d0] sm:$0xff] }
  0xb4   :  { %2551 = vmatpush2.bf16.msra.mxu0 %v3670_v29  ;;  %v187_v29 = vld [vmem:[%s5321_s1 + $0x530] sm:$0xff] }
  0xb5   :  { %2552 = vmatprep.subr.bf16.mxu0 %v3663_v32  ;;  %v3616_v32 = vcombine.low %v191_v19, %v195_v20  ;;  %v3609_v36 = vcombine.high %v183_v28, %v187_v29  ;;  %v139_v19 = vld [vmem:[%s5321_s1 + $0x3b0] sm:$0xff] }
  0xb6   :  { %2592 = vmatpush2.bf16.msra.mxu1 %v3798_v30  ;;  %v3488_v30 = vcombine.low %v63_v17, %v67_v18  ;;  %v135_v18 = vld [vmem:[%s5321_s1 + $0x390] sm:$0xff] }
  0xb7   :  { %2593 = vmatprep.subr.bf16.mxu1 %v3791_v33  ;;  %v3481_v33 = vcombine.high %v55_v26, %v59_v27  ;;  %v263_v20 = vld [vmem:[%s5321_s1 + $0x790] sm:$0xff] }
  0xb8   :  { %2553 = vmatpush2.bf16.msra.mxu0 %v3662_v39  ;;  %v179_v39 = vld [vmem:[%s5321_s1 + $0x4f0] sm:$0xff] }
  0xb9   :  { %2554 = vmatprep.subr.bf16.mxu0 %v3655_v5  ;;  %v3608_v5 = vcombine.low %v183_v28, %v187_v29  ;;  %v3601_v43 = vcombine.high %v175_v38, %v179_v39  ;;  %v131_v28 = vld [vmem:[%s5321_s1 + $0x370] sm:$0xff] }
  0xba   :  { %2594 = vmatpush2.bf16.msra.mxu1 %v3790_v40  ;;  %v3480_v40 = vcombine.low %v55_v26, %v59_v27  ;;  %v127_v27 = vld [vmem:[%s5321_s1 + $0x350] sm:$0xff] }
  0xbb   :  { %2595 = vmatprep.subr.bf16.mxu1 %v3783_v42  ;;  %v3473_v42 = vcombine.high %v47_v37, %v51_v63  ;;  %v255_v29 = vld [vmem:[%s5321_s1 + $0x750] sm:$0xff] }
  0xbc   :  { %2555 = vmatpush2.bf16.msra.mxu0 %v3654_v48  ;;  %v171_v48 = vld [vmem:[%s5321_s1 + $0x4b0] sm:$0xff] }
  0xbd   :  { %2556 = vmatprep.subr.bf16.mxu0 %v3647_v50  ;;  %v3600_v50 = vcombine.low %v175_v38, %v179_v39  ;;  %v3593_v54 = vcombine.high %v167_v47, %v171_v48  ;;  %v123_v38 = vld [vmem:[%s5321_s1 + $0x330] sm:$0xff] }
  0xbe   :  { %2596 = vmatpush2.bf16.msra.mxu1 %v3782_v49  ;;  %v3472_v49 = vcombine.low %v47_v37, %v51_v63  ;;  %v119_v63 = vld [vmem:[%s5321_s1 + $0x310] sm:$0xff] }
  0xbf   :  { %2597 = vmatprep.subr.bf16.mxu1 %v3775_v51  ;;  %v3465_v51 = vcombine.high %v39_v45, %v43_v46  ;;  %v247_v39 = vld [vmem:[%s5321_s1 + $0x710] sm:$0xff] }
  0xc0   :  { %2557 = vmatpush2.bf16.msra.mxu0 %v3646_v58  ;;  %v163_v58 = vld [vmem:[%s5321_s1 + $0x470] sm:$0xff] }
  0xc1   :  { %2558 = vmatprep.subr.bf16.mxu0 %v3639_v23  ;;  %v3592_v23 = vcombine.low %v167_v47, %v171_v48  ;;  %v3585_v61 = vcombine.high %v159_v57, %v163_v58  ;;  %v115_v47 = vld [vmem:[%s5321_s1 + $0x2f0] sm:$0xff] }
  0xc2   :  { %2598 = vmatpush2.bf16.msra.mxu1 %v3774_v59  ;;  %v3464_v59 = vcombine.low %v39_v45, %v43_v46  ;;  %v111_v46 = vld [vmem:[%s5321_s1 + $0x2d0] sm:$0xff] }
  0xc3   :  { %2599 = vmatprep.subr.bf16.mxu1 %v3767_v60  ;;  %v3457_v60 = vcombine.high %v31_v55, %v35_v56  ;;  %v239_v48 = vld [vmem:[%s5321_s1 + $0x6d0] sm:$0xff] }
  0xc4   :  { %2559 = vmatpush2.bf16.msra.mxu0 %v3638_v2  ;;  %v155_v2 = vld [vmem:[%s5321_s1 + $0x430] sm:$0xff] }
  0xc5   :  { %2610 = vmatprep.subr.bf16.mxu0 %v3505_v4  ;;  %v3584_v4 = vcombine.low %v159_v57, %v163_v58  ;;  %v3577_v7 = vcombine.high %v151_v1, %v155_v2  ;;  %v107_v57 = vld [vmem:[%s5321_s1 + $0x2b0] sm:$0xff] }
  0xc6   :  { %2600 = vmatpush2.bf16.msra.mxu1 %v3766_v3  ;;  %v3456_v3 = vcombine.low %v31_v55, %v35_v56  ;;  %v103_v56 = vld [vmem:[%s5321_s1 + $0x290] sm:$0xff] }
  0xc7   :  { %2651 = vmatprep.subr.bf16.mxu1 %v3633_v6  ;;  %2561 = vmatmul.mubr.bf16.vlgmr.msra.gmra.mxu0 %v4151_v35  ;;  %v3449_v6 = vcombine.high %v23_v62, %v27_v0  ;;  %v231_v58 = vld [vmem:[%s5321_s1 + $0x690] sm:$0xff] }
  0xc8   :  { %2611 = vmatpush1.bf16.msra.mxu0 %v3504_v12  ;;  %2642 = vmatprep.mubr.bf16.mxu0 %v4016_v11  ;;  %v275_v12 = vld [vmem:[%s5321_s1 + $0x7f0] sm:$0xff] }
  0xc9   :  { %2602 = vmatmul.mubr.bf16.vlgmr.msra.gmra.mxu1 %v4347_v52  ;;  %2612 = vmatprep.subr.bf16.mxu0 %v3497_v14  ;;  %v3576_v14 = vcombine.low %v151_v1, %v155_v2  ;;  %v3697_v17 = vcombine.high %v271_v10, %v275_v12  ;;  %v99_v1 = vld [vmem:[%s5321_s1 + $0x270] sm:$0xff] }
  0xca   :  { %2652 = vmatpush1.bf16.msra.mxu1 %v3632_v13  ;;  %2683 = vmatprep.mubr.bf16.mxu1 %v4027_v16  ;;  %v3448_v13 = vcombine.low %v23_v62, %v27_v0  ;;  %v95_v0 = vld [vmem:[%s5321_s1 + $0x250] sm:$0xff] }
  0xcb   :  { %2653 = vmatprep.subr.bf16.mxu1 %v3625_v15  ;;  %v3569_v15 = vcombine.high %v143_v8, %v147_v9  ;;  %v223_v2 = vld [vmem:[%s5321_s1 + $0x650] sm:$0xff] }
  0xcc   :  { %2613 = vmatpush1.bf16.msra.mxu0 %v3496_v21  ;;  %v267_v21 = vld [vmem:[%s5321_s1 + $0x7b0] sm:$0xff] }
  0xcd   :  { %2614 = vmatprep.subr.bf16.mxu0 %v3489_v24  ;;  %v3696_v24 = vcombine.low %v271_v10, %v275_v12  ;;  %v3689_v26 = vcombine.high %v263_v20, %v267_v21  ;;  %v91_v10 = vld [vmem:[%s5321_s1 + $0x230] sm:$0xff] }
  0xce   :  { %2654 = vmatpush1.bf16.msra.mxu1 %v3624_v22  ;;  %v3568_v22 = vcombine.low %v143_v8, %v147_v9  ;;  %v87_v9 = vld [vmem:[%s5321_s1 + $0x210] sm:$0xff] }
  0xcf   :  { %2655 = vmatprep.subr.bf16.mxu1 %v3617_v25  ;;  %v3561_v25 = vcombine.high %v135_v18, %v139_v19  ;;  %v215_v12 = vld [vmem:[%s5321_s1 + $0x610] sm:$0xff] }
  0xd0   :  { %2615 = vmatpush1.bf16.msra.mxu0 %v3488_v30  ;;  %v259_v30 = vld [vmem:[%s5321_s1 + $0x770] sm:$0xff] }
  0xd1   :  { %2616 = vmatprep.subr.bf16.mxu0 %v3481_v33  ;;  %v3688_v33 = vcombine.low %v263_v20, %v267_v21  ;;  %v3681_v37 = vcombine.high %v255_v29, %v259_v30  ;;  %v339_v20 = vld [vmem:[%s5321_s1 + $0x9f0] sm:$0xff]  ;;  %v80_v21 = vld [vmem:[%s5321_s1 + $0x1d8] sm:$0xff] }
  0xd2   :  { %2656 = vmatpush1.bf16.msra.mxu1 %v3616_v32  ;;  %v3560_v32 = vcombine.low %v135_v18, %v139_v19  ;;  %v335_v19 = vld [vmem:[%s5321_s1 + $0x9d0] sm:$0xff] }
  0xd3   :  { %2657 = vmatprep.subr.bf16.mxu1 %v3609_v36  ;;  %v3553_v36 = vcombine.high %v127_v27, %v131_v28 }
  0xd4   :  { %2617 = vmatpush1.bf16.msra.mxu0 %v3480_v40  ;;  %v251_v40 = vld [vmem:[%s5321_s1 + $0x730] sm:$0xff] }
  0xd5   :  { %2618 = vmatprep.subr.bf16.mxu0 %v3473_v42  ;;  %v3680_v42 = vcombine.low %v255_v29, %v259_v30  ;;  %v3673_v45 = vcombine.high %v247_v39, %v251_v40  ;;  %v331_v29 = vld [vmem:[%s5321_s1 + $0x9b0] sm:$0xff]  ;;  %v72_v30 = vld [vmem:[%s5321_s1 + $0x198] sm:$0xff] }
  0xd6   :  { %2658 = vmatpush1.bf16.msra.mxu1 %v3608_v5  ;;  %v3552_v5 = vcombine.low %v127_v27, %v131_v28  ;;  %v327_v28 = vld [vmem:[%s5321_s1 + $0x990] sm:$0xff] }
  0xd7   :  { %2659 = vmatprep.subr.bf16.mxu1 %v3601_v43  ;;  %v3545_v43 = vcombine.high %v119_v63, %v123_v38 }
  0xd8   :  { %2619 = vmatpush1.bf16.msra.mxu0 %v3472_v49  ;;  %v243_v49 = vld [vmem:[%s5321_s1 + $0x6f0] sm:$0xff] }
  0xd9   :  { %2620 = vmatprep.subr.bf16.mxu0 %v3465_v51  ;;  %v3672_v51 = vcombine.low %v247_v39, %v251_v40  ;;  %v3665_v55 = vcombine.high %v239_v48, %v243_v49  ;;  %v323_v39 = vld [vmem:[%s5321_s1 + $0x970] sm:$0xff] }
  0xda   :  { %2660 = vmatpush1.bf16.msra.mxu1 %v3600_v50  ;;  %v3544_v50 = vcombine.low %v119_v63, %v123_v38  ;;  %v319_v38 = vld [vmem:[%s5321_s1 + $0x950] sm:$0xff] }
  0xdb   :  { %2661 = vmatprep.subr.bf16.mxu1 %v3593_v54  ;;  %v3537_v54 = vcombine.high %v111_v46, %v115_v47 }
  0xdc   :  { %2621 = vmatpush1.bf16.msra.mxu0 %v3464_v59  ;;  %v235_v59 = vld [vmem:[%s5321_s1 + $0x6b0] sm:$0xff] }
  0xdd   :  { %2622 = vmatprep.subr.bf16.mxu0 %v3457_v60  ;;  %v3664_v60 = vcombine.low %v239_v48, %v243_v49  ;;  %v3657_v62 = vcombine.high %v231_v58, %v235_v59  ;;  %v3745_v49 = vcombine.high %v319_v38, %v323_v39 }
  0xde   :  { %2662 = vmatpush1.bf16.msra.mxu1 %v3592_v23  ;;  %v3536_v23 = vcombine.low %v111_v46, %v115_v47 }
  0xdf   :  { %2663 = vmatprep.subr.bf16.mxu1 %v3585_v61  ;;  %v3529_v61 = vcombine.high %v103_v56, %v107_v57 }
  0xe0   :  { %2623 = vmatpush1.bf16.msra.mxu0 %v3456_v3  ;;  %v227_v3 = vld [vmem:[%s5321_s1 + $0x670] sm:$0xff] }
  0xe1   :  { %2624 = vmatprep.subr.bf16.mxu0 %v3449_v6  ;;  %v3656_v6 = vcombine.low %v231_v58, %v235_v59  ;;  %v3649_v8 = vcombine.high %v223_v2, %v227_v3  ;;  %v56_v58 = vld [vmem:[%s5321_s1 + $0x118] sm:$0xff] }
  0xe2   :  { %2664 = vmatpush1.bf16.msra.mxu1 %v3584_v4  ;;  %v3528_v4 = vcombine.low %v103_v56, %v107_v57  ;;  %v60_v59 = vld [vmem:[%s5321_s1 + $0x138] sm:$0xff] }
  0xe3   :  { %2665 = vmatprep.subr.bf16.mxu1 %v3577_v7  ;;  %v3521_v7 = vcombine.high %v95_v0, %v99_v1 }
  0xe4   :  { %2625 = vmatpush1.bf16.msra.mxu0 %v3448_v13  ;;  %v219_v13 = vld [vmem:[%s5321_s1 + $0x630] sm:$0xff] }
  0xe5   :  { %2626 = vmatprep.subr.bf16.mxu0 %v3569_v15  ;;  %v3648_v15 = vcombine.low %v223_v2, %v227_v3  ;;  %v3641_v18 = vcombine.high %v215_v12, %v219_v13  ;;  %v3483_v2 = vcombine.high %v56_v58, %v60_v59  ;;  %v303_v3 = vld [vmem:[%s5321_s1 + $0x8d0] sm:$0xff] }
  0xe6   :  { %2666 = vmatpush1.bf16.msra.mxu1 %v3576_v14  ;;  %v3520_v14 = vcombine.low %v95_v0, %v99_v1 }
  0xe7   :  { %2667 = vmatprep.subr.bf16.mxu1 %v3697_v17  ;;  %v3513_v17 = vcombine.high %v87_v9, %v91_v10 }
  0xe8   :  { %2627 = vmatpush2.bf16.msra.mxu0 %v3568_v22  ;;  %v84_v22 = vld [vmem:[%s5321_s1 + $0x1f8] sm:$0xff] }
  0xe9   :  { %2628 = vmatprep.subr.bf16.mxu0 %v3561_v25  ;;  %v3640_v25 = vcombine.low %v215_v12, %v219_v13  ;;  %v3507_v27 = vcombine.high %v80_v21, %v84_v22  ;;  %v295_v12 = vld [vmem:[%s5321_s1 + $0x890] sm:$0xff] }
  0xea   :  { %2668 = vmatpush2.bf16.msra.mxu1 %v3696_v24  ;;  %v3512_v24 = vcombine.low %v87_v9, %v91_v10  ;;  %v299_v13 = vld [vmem:[%s5321_s1 + $0x8b0] sm:$0xff] }
  0xeb   :  { %2669 = vmatprep.subr.bf16.mxu1 %v3689_v26  ;;  %v3761_v26 = vcombine.high %v335_v19, %v339_v20 }
  0xec   :  { %2629 = vmatpush2.bf16.msra.mxu0 %v3560_v32  ;;  %v76_v32 = vld [vmem:[%s5321_s1 + $0x1b8] sm:$0xff] }
  0xed   :  { %2630 = vmatprep.subr.bf16.mxu0 %v3553_v36  ;;  %v3506_v36 = vcombine.low %v80_v21, %v84_v22  ;;  %v3499_v63 = vcombine.high %v72_v30, %v76_v32  ;;  %v3498_v48 = vcombine.low %v72_v30, %v76_v32  ;;  %v287_v21 = vld [vmem:[%s5321_s1 + $0x850] sm:$0xff] }
  0xee   :  { %2670 = vmatpush2.bf16.msra.mxu1 %v3688_v33  ;;  %v3760_v33 = vcombine.low %v335_v19, %v339_v20  ;;  %v3721_v19 = vcombine.high %v295_v12, %v299_v13  ;;  %v291_v22 = vld [vmem:[%s5321_s1 + $0x870] sm:$0xff] }
  0xef   :  { %2671 = vmatprep.subr.bf16.mxu1 %v3681_v37  ;;  %v3753_v37 = vcombine.high %v327_v28, %v331_v29  ;;  %v279_v30 = vld [vmem:[%s5321_s1 + $0x810] sm:$0xff] }
  0xf0   :  { %2631 = vmatpush2.bf16.msra.mxu0 %v3552_v5  ;;  %v64_v5 = vld [vmem:[%s5321_s1 + $0x158] sm:$0xff]  ;;  %v283_v32 = vld [vmem:[%s5321_s1 + $0x830] sm:$0xff] }
  0xf1   :  { %2632 = vmatprep.subr.bf16.mxu0 %v3545_v43 }
  0xf2   :  { %2672 = vmatpush2.bf16.msra.mxu1 %v3680_v42  ;;  %v68_v42 = vld [vmem:[%s5321_s1 + $0x178] sm:$0xff] }
  0xf3   :  { %2673 = vmatprep.subr.bf16.mxu1 %v3673_v45  ;;  %v3752_v45 = vcombine.low %v327_v28, %v331_v29  ;;  %v3713_v28 = vcombine.high %v287_v21, %v291_v22 }
  0xf4   :  { %2633 = vmatpush2.bf16.msra.mxu0 %v3544_v50 }
  0xf5   :  { %2634 = vmatprep.subr.bf16.mxu0 %v3537_v54  ;;  %v311_v54 = vld [vmem:[%s5321_s1 + $0x910] sm:$0xff] }
  0xf6   :  { %2674 = vmatpush2.bf16.msra.mxu1 %v3672_v51  ;;  %v3491_v51 = vcombine.high %v64_v5, %v68_v42 }
  0xf7   :  { %2675 = vmatprep.subr.bf16.mxu1 %v3665_v55  ;;  %v315_v55 = vld [vmem:[%s5321_s1 + $0x930] sm:$0xff] }
  0xf8   :  { %2635 = vmatpush2.bf16.msra.mxu0 %v3536_v23  ;;  %v3737_v0 = vcombine.high %v311_v54, %v315_v55 }
  0xf9   :  { %2636 = vmatprep.subr.bf16.mxu0 %v3529_v61 }
  0xfa   :  { %2676 = vmatpush2.bf16.msra.mxu1 %v3664_v60  ;;  %v3744_v60 = vcombine.low %v319_v38, %v323_v39  ;;  %v3705_v38 = vcombine.high %v279_v30, %v283_v32 }
  0xfb   :  { %2677 = vmatprep.subr.bf16.mxu1 %v3657_v62  ;;  %v3490_v62 = vcombine.low %v64_v5, %v68_v42  ;;  %v403_v5 = vld [vmem:[%s5321_s1 + $0xbf0] sm:$0xff]  ;;  %v144_v42 = vld [vmem:[%s5321_s1 + $0x3d8] sm:$0xff] }
  0xfc   :  { %2637 = vmatpush2.bf16.msra.mxu0 %v3528_v4  ;;  %v307_v4 = vld [vmem:[%s5321_s1 + $0x8f0] sm:$0xff] }
  0xfd   :  { %2638 = vmatprep.subr.bf16.mxu0 %v3521_v7  ;;  %v3736_v7 = vcombine.low %v311_v54, %v315_v55  ;;  %v3729_v9 = vcombine.high %v303_v3, %v307_v4  ;;  %v136_v54 = vld [vmem:[%s5321_s1 + $0x398] sm:$0xff] }
  0xfe   :  { %2678 = vmatpush2.bf16.msra.mxu1 %v3656_v6  ;;  %v52_v6 = vld [vmem:[%s5321_s1 + $0xf8] sm:$0xff] }
  0xff   :  { %2679 = vmatprep.subr.bf16.mxu1 %v3649_v8  ;;  %v3482_v8 = vcombine.low %v56_v58, %v60_v59  ;;  %v140_v55 = vld [vmem:[%s5321_s1 + $0x3b8] sm:$0xff] }
 0x100   :  { %2639 = vmatpush2.bf16.msra.mxu0 %v3520_v14  ;;  %v40_v14 = vld [vmem:[%s5321_s1 + $0x98] sm:$0xff] }
 0x101   :  { %2640 = vmatprep.subr.bf16.mxu0 %v3513_v17  ;;  %v3728_v17 = vcombine.low %v303_v3, %v307_v4 }
 0x102   :  { %2680 = vmatpush2.bf16.msra.mxu1 %v3648_v15  ;;  %v44_v15 = vld [vmem:[%s5321_s1 + $0xb8] sm:$0xff] }
 0x103   :  { %2681 = vmatprep.subr.bf16.mxu1 %v3641_v18  ;;  %v3467_v20 = vcombine.high %v40_v14, %v44_v15 }
 0x104   :  { %2641 = vmatpush2.bf16.msra.mxu0 %v3512_v24  ;;  %v32_v24 = vld [vmem:[%s5321_s1 + $0x58] sm:$0xff] }
 0x105   :  { %2692 = vmatprep.subr.bf16.mxu0 %v3761_v26  ;;  %v3720_v26 = vcombine.low %v295_v12, %v299_v13 }
 0x106   :  { %2682 = vmatpush2.bf16.msra.mxu1 %v3640_v25  ;;  %v36_v25 = vld [vmem:[%s5321_s1 + $0x78] sm:$0xff] }
 0x107   :  { %2733 = vmatprep.subr.bf16.mxu1 %v3507_v27  ;;  %v2398_v40 = vpop.f32.mrf.mxu0  ;;  %2643 = vmatmul.mubr.bf16.vlgmr.msra.gmra.mxu0 %v4141_v31  ;;  %v3466_v27 = vcombine.low %v40_v14, %v44_v15  ;;  %v3459_v29 = vcombine.high %v32_v24, %v36_v25  ;;  %v367_v14 = vld [vmem:[%s5321_s1 + $0xad0] sm:$0xff] }
 0x108   :  { %2693 = vmatpush1.bf16.msra.mxu0 %v3760_v33  ;;  %2724 = vmatprep.mubr.bf16.mxu0 %v4159_v41  ;;  %v24_v33 = vld [vmem:[%s5321_s1 + $0x18] sm:$0xff]  ;;  %v371_v15 = vld [vmem:[%s5321_s1 + $0xaf0] sm:$0xff] }
 0x109   :  { %v2439_v43 = vpop.f32.mrf.mxu1  ;;  %2684 = vmatmul.mubr.bf16.vlgmr.msra.gmra.mxu1 %v4151_v35  ;;  %v2400_v47 = vpop.f32.mrf.mxu0  ;;  %2694 = vmatprep.subr.bf16.mxu0 %v3753_v37  ;;  %v3712_v37 = vcombine.low %v287_v21, %v291_v22  ;;  %v3793_v21 = vcombine.high %v367_v14, %v371_v15 }
 0x10a   :  { %v4761_v46 = vadd.f32 %v2439_v43, %v2398_v40  ;;  %2734 = vmatpush1.bf16.msra.mxu1 %v3506_v36  ;;  %2765 = vmatprep.mubr.bf16.mxu1 %v4016_v11  ;;  %v48_v11 = vld [vmem:[%s5321_s1 + $0xd8] sm:$0xff]  ;;  %v399_v40 = vld [vmem:[%s5321_s1 + $0xbd0] sm:$0xff] }
 0x10b   :  { %v2441_v50 = vpop.f32.mrf.mxu1  ;;  %2735 = vmatprep.subr.bf16.mxu1 %v3499_v63  ;;  %v2402_v57 = vpop.f32.mrf.mxu0  ;;  %v3475_v10 = vcombine.high %v48_v11, %v52_v6  ;;  %v3474_v18 = vcombine.low %v48_v11, %v52_v6  ;;  %v28_v36 = vld [vmem:[%s5321_s1 + $0x38] sm:$0xff]  ;;  %v3458_v63 = vcombine.low %v32_v24, %v36_v25  ;;  %v375_v11 = vld [vmem:[%s5321_s1 + $0xb10] sm:$0xff] }
 0x10c   :  { %v4770_v56 = vadd.f32 %v2441_v50, %v2400_v47  ;;  %2695 = vmatpush1.bf16.msra.mxu0 %v3752_v45  ;;  %v3451_v39 = vcombine.high %v24_v33, %v28_v36  ;;  %v148_v43 = vld [vmem:[%s5321_s1 + $0x3f8] sm:$0xff]  ;;  %v3704_v45 = vcombine.low %v279_v30, %v283_v32  ;;  %v3450_v47 = vcombine.low %v24_v33, %v28_v36  ;;  %v391_v50 = vld [vmem:[%s5321_s1 + $0xb90] sm:$0xff] }
 0x10d   :  { %v2443_v23 = vpop.f32.mrf.mxu1  ;;  %v2403_v61 = vpop.f32.mrf.mxu0  ;;  %2696 = vmatprep.subr.bf16.mxu0 %v3745_v49  ;;  %v3571_v49 = vcombine.high %v144_v42, %v148_v43  ;;  %v3824_v57 = vcombine.low %v399_v40, %v403_v5  ;;  %v3570_v58 = vcombine.low %v144_v42, %v148_v43  ;;  %v379_v6 = vld [vmem:[%s5321_s1 + $0xb30] sm:$0xff] }
 0x10e   :  { %2736 = vmatpush1.bf16.msra.mxu1 %v3498_v48  ;;  %v3825_v48 = vcombine.high %v399_v40, %v403_v5  ;;  %v3563_v23 = vcombine.high %v136_v54, %v140_v55  ;;  %v387_v61 = vld [vmem:[%s5321_s1 + $0xb70] sm:$0xff]  ;;  %v3801_v12 = vcombine.high %v375_v11, %v379_v6 }
 0x10f   :  { %v2444_v1 = vpop.f32.mrf.mxu1  ;;  %2737 = vmatprep.subr.bf16.mxu1 %v3491_v51  ;;  %v395_v51 = vld [vmem:[%s5321_s1 + $0xbb0] sm:$0xff] }
 0x110   :  { %2697 = vmatpush1.bf16.msra.mxu0 %v3744_v60  ;;  %v3817_v59 = vcombine.high %v391_v50, %v395_v51  ;;  %v383_v60 = vld [vmem:[%s5321_s1 + $0xb50] sm:$0xff]  ;;  %v3816_v1 = vcombine.low %v391_v50, %v395_v51 }
 0x111   :  { %2698 = vmatprep.subr.bf16.mxu0 %v3737_v0  ;;  %v132_v0 = vld [vmem:[%s5321_s1 + $0x378] sm:$0xff]  ;;  %v3809_v3 = vcombine.high %v383_v60, %v387_v61  ;;  %v359_v24 = vld [vmem:[%s5321_s1 + $0xa90] sm:$0xff] }
 0x112   :  { %2738 = vmatpush1.bf16.msra.mxu1 %v3490_v62  ;;  %v128_v62 = vld [vmem:[%s5321_s1 + $0x358] sm:$0xff]  ;;  %v363_v25 = vld [vmem:[%s5321_s1 + $0xab0] sm:$0xff] }
 0x113   :  { %2739 = vmatprep.subr.bf16.mxu1 %v3483_v2  ;;  %v3562_v2 = vcombine.low %v136_v54, %v140_v55  ;;  %v3555_v4 = vcombine.high %v128_v62, %v132_v0  ;;  %v3785_v30 = vcombine.high %v359_v24, %v363_v25  ;;  %v351_v33 = vld [vmem:[%s5321_s1 + $0xa50] sm:$0xff]  ;;  %v208_v54 = vld [vmem:[%s5321_s1 + $0x5d8] sm:$0xff] }
 0x114   :  { %2699 = vmatpush1.bf16.msra.mxu0 %v3736_v7  ;;  %v120_v7 = vld [vmem:[%s5321_s1 + $0x318] sm:$0xff]  ;;  %v355_v36 = vld [vmem:[%s5321_s1 + $0xa70] sm:$0xff] }
 0x115   :  { %2700 = vmatprep.subr.bf16.mxu0 %v3729_v9  ;;  %v3808_v9 = vcombine.low %v383_v60, %v387_v61  ;;  %v3777_v40 = vcombine.high %v351_v33, %v355_v36  ;;  %v343_v42 = vld [vmem:[%s5321_s1 + $0xa10] sm:$0xff]  ;;  %v212_v55 = vld [vmem:[%s5321_s1 + $0x5f8] sm:$0xff] }
 0x116   :  { %2740 = vmatpush1.bf16.msra.mxu1 %v3482_v8  ;;  %v124_v8 = vld [vmem:[%s5321_s1 + $0x338] sm:$0xff]  ;;  %v347_v43 = vld [vmem:[%s5321_s1 + $0xa30] sm:$0xff]  ;;  %v3635_v60 = vcombine.high %v208_v54, %v212_v55 }
 0x117   :  { %2741 = vmatprep.subr.bf16.mxu1 %v3475_v10  ;;  %v3554_v10 = vcombine.low %v128_v62, %v132_v0  ;;  %v3547_v13 = vcombine.high %v120_v7, %v124_v8  ;;  %v3769_v50 = vcombine.high %v343_v42, %v347_v43  ;;  %v200_v62 = vld [vmem:[%s5321_s1 + $0x598] sm:$0xff] }
 0x118   :  { %2701 = vmatpush1.bf16.msra.mxu0 %v3728_v17  ;;  %v112_v17 = vld [vmem:[%s5321_s1 + $0x2d8] sm:$0xff] }
 0x119   :  { %2702 = vmatprep.subr.bf16.mxu0 %v3721_v19  ;;  %v3800_v19 = vcombine.low %v375_v11, %v379_v6  ;;  %v204_v0 = vld [vmem:[%s5321_s1 + $0x5b8] sm:$0xff] }
 0x11a   :  { %2742 = vmatpush1.bf16.msra.mxu1 %v3474_v18  ;;  %v116_v18 = vld [vmem:[%s5321_s1 + $0x2f8] sm:$0xff]  ;;  %v3627_v11 = vcombine.high %v200_v62, %v204_v0 }
 0x11b   :  { %2743 = vmatprep.subr.bf16.mxu1 %v3467_v20  ;;  %v3546_v20 = vcombine.low %v120_v7, %v124_v8  ;;  %v3539_v22 = vcombine.high %v112_v17, %v116_v18  ;;  %v192_v7 = vld [vmem:[%s5321_s1 + $0x558] sm:$0xff] }
 0x11c   :  { %2703 = vmatpush1.bf16.msra.mxu0 %v3720_v26  ;;  %v104_v26 = vld [vmem:[%s5321_s1 + $0x298] sm:$0xff] }
 0x11d   :  { %2704 = vmatprep.subr.bf16.mxu0 %v3713_v28  ;;  %v3792_v28 = vcombine.low %v367_v14, %v371_v15  ;;  %v196_v8 = vld [vmem:[%s5321_s1 + $0x578] sm:$0xff]  ;;  %v3626_v15 = vcombine.low %v200_v62, %v204_v0 }
 0x11e   :  { %2744 = vmatpush1.bf16.msra.mxu1 %v3466_v27  ;;  %v108_v27 = vld [vmem:[%s5321_s1 + $0x2b8] sm:$0xff] }
 0x11f   :  { %2745 = vmatprep.subr.bf16.mxu1 %v3459_v29  ;;  %v3538_v29 = vcombine.low %v112_v17, %v116_v18  ;;  %v3531_v32 = vcombine.high %v104_v26, %v108_v27  ;;  %v156_v62 = vld [vmem:[%s5321_s1 + $0x438] sm:$0xff] }
 0x120   :  { %2705 = vmatpush1.bf16.msra.mxu0 %v3712_v37  ;;  %v96_v37 = vld [vmem:[%s5321_s1 + $0x258] sm:$0xff] }
 0x121   :  { %2706 = vmatprep.subr.bf16.mxu0 %v3705_v38  ;;  %v3784_v38 = vcombine.low %v359_v24, %v363_v25  ;;  %v316_v25 = vld [vmem:[%s5321_s1 + $0x938] sm:$0xff] }
 0x122   :  { %2746 = vmatpush1.bf16.msra.mxu1 %v3458_v63  ;;  %v100_v63 = vld [vmem:[%s5321_s1 + $0x278] sm:$0xff] }
 0x123   :  { %2747 = vmatprep.subr.bf16.mxu1 %v3451_v39  ;;  %v3530_v39 = vcombine.low %v104_v26, %v108_v27  ;;  %v3523_v5 = vcombine.high %v96_v37, %v100_v63  ;;  %v3618_v27 = vcombine.low %v192_v7, %v196_v8  ;;  %v280_v0 = vld [vmem:[%s5321_s1 + $0x818] sm:$0xff] }
 0x124   :  { %2707 = vmatpush1.bf16.msra.mxu0 %v3704_v45  ;;  %v88_v45 = vld [vmem:[%s5321_s1 + $0x218] sm:$0xff] }
 0x125   :  { %2708 = vmatprep.subr.bf16.mxu0 %v3825_v48  ;;  %v3776_v48 = vcombine.low %v351_v33, %v355_v36  ;;  %v176_v33 = vld [vmem:[%s5321_s1 + $0x4d8] sm:$0xff] }
 0x126   :  { %2748 = vmatpush1.bf16.msra.mxu1 %v3450_v47  ;;  %v92_v47 = vld [vmem:[%s5321_s1 + $0x238] sm:$0xff] }
 0x127   :  { %2749 = vmatprep.subr.bf16.mxu1 %v3571_v49  ;;  %v3522_v49 = vcombine.low %v96_v37, %v100_v63  ;;  %v3515_v51 = vcombine.high %v88_v45, %v92_v47  ;;  %v180_v36 = vld [vmem:[%s5321_s1 + $0x4f8] sm:$0xff] }
 0x128   :  { %2709 = vmatpush2.bf16.msra.mxu0 %v3824_v57  ;;  %v336_v57 = vld [vmem:[%s5321_s1 + $0x9d8] sm:$0xff] }
 0x129   :  { %2710 = vmatprep.subr.bf16.mxu0 %v3817_v59  ;;  %v3768_v59 = vcombine.low %v343_v42, %v347_v43  ;;  %v308_v37 = vld [vmem:[%s5321_s1 + $0x8f8] sm:$0xff] }
 0x12a   :  { %2750 = vmatpush2.bf16.msra.mxu1 %v3570_v58  ;;  %v340_v58 = vld [vmem:[%s5321_s1 + $0x9f8] sm:$0xff] }
 0x12b   :  { %2751 = vmatprep.subr.bf16.mxu1 %v3563_v23  ;;  %v3514_v23 = vcombine.low %v88_v45, %v92_v47  ;;  %v3763_v61 = vcombine.high %v336_v57, %v340_v58  ;;  %v172_v42 = vld [vmem:[%s5321_s1 + $0x4b8] sm:$0xff]  ;;  %v3602_v47 = vcombine.low %v176_v33, %v180_v36 }
 0x12c   :  { %2711 = vmatpush2.bf16.msra.mxu0 %v3816_v1  ;;  %v328_v1 = vld [vmem:[%s5321_s1 + $0x998] sm:$0xff] }
 0x12d   :  { %2712 = vmatprep.subr.bf16.mxu0 %v3809_v3  ;;  %v3634_v3 = vcombine.low %v208_v54, %v212_v55  ;;  %v296_v43 = vld [vmem:[%s5321_s1 + $0x898] sm:$0xff] }
 0x12e   :  { %2752 = vmatpush2.bf16.msra.mxu1 %v3562_v2  ;;  %v332_v2 = vld [vmem:[%s5321_s1 + $0x9b8] sm:$0xff] }
 0x12f   :  { %2753 = vmatprep.subr.bf16.mxu1 %v3555_v4  ;;  %v3762_v4 = vcombine.low %v336_v57, %v340_v58  ;;  %v3755_v6 = vcombine.high %v328_v1, %v332_v2  ;;  %v3754_v18 = vcombine.low %v328_v1, %v332_v2  ;;  %v300_v45 = vld [vmem:[%s5321_s1 + $0x8b8] sm:$0xff] }
 0x130   :  { %2713 = vmatpush2.bf16.msra.mxu0 %v3808_v9  ;;  %v164_v54 = vld [vmem:[%s5321_s1 + $0x478] sm:$0xff] }
 0x131   :  { %2714 = vmatprep.subr.bf16.mxu0 %v3801_v12  ;;  %v324_v12 = vld [vmem:[%s5321_s1 + $0x978] sm:$0xff] }
 0x132   :  { %2754 = vmatpush2.bf16.msra.mxu1 %v3554_v10  ;;  %v320_v10 = vld [vmem:[%s5321_s1 + $0x958] sm:$0xff] }
 0x133   :  { %2755 = vmatprep.subr.bf16.mxu1 %v3547_v13  ;;  %v288_v55 = vld [vmem:[%s5321_s1 + $0x858] sm:$0xff] }
 0x134   :  { %2715 = vmatpush2.bf16.msra.mxu0 %v3800_v19  ;;  %v3619_v19 = vcombine.high %v192_v7, %v196_v8  ;;  %v292_v57 = vld [vmem:[%s5321_s1 + $0x878] sm:$0xff] }
 0x135   :  { %2716 = vmatprep.subr.bf16.mxu0 %v3793_v21  ;;  %v284_v1 = vld [vmem:[%s5321_s1 + $0x838] sm:$0xff] }
 0x136   :  { %2756 = vmatpush2.bf16.msra.mxu1 %v3546_v20  ;;  %v276_v7 = vld [vmem:[%s5321_s1 + $0x7f8] sm:$0xff] }
 0x137   :  { %2757 = vmatprep.subr.bf16.mxu1 %v3539_v22  ;;  %v3747_v22 = vcombine.high %v320_v10, %v324_v12  ;;  %v400_v8 = vld [vmem:[%s5321_s1 + $0xbd8] sm:$0xff] }
 0x138   :  { %2717 = vmatpush2.bf16.msra.mxu0 %v3792_v28 }
 0x139   :  { %2718 = vmatprep.subr.bf16.mxu0 %v3785_v30 }
 0x13a   :  { %2758 = vmatpush2.bf16.msra.mxu1 %v3538_v29  ;;  %v3746_v29 = vcombine.low %v320_v10, %v324_v12  ;;  %v3706_v12 = vcombine.low %v280_v0, %v284_v1 }
 0x13b   :  { %2759 = vmatprep.subr.bf16.mxu1 %v3531_v32 }
 0x13c   :  { %2719 = vmatpush2.bf16.msra.mxu0 %v3784_v38 }
 0x13d   :  { %2720 = vmatprep.subr.bf16.mxu0 %v3777_v40 }
 0x13e   :  { %2760 = vmatpush2.bf16.msra.mxu1 %v3530_v39  ;;  %v3603_v39 = vcombine.high %v176_v33, %v180_v36  ;;  %v248_v36 = vld [vmem:[%s5321_s1 + $0x718] sm:$0xff] }
 0x13f   :  { %2761 = vmatprep.subr.bf16.mxu1 %v3523_v5  ;;  %v168_v5 = vld [vmem:[%s5321_s1 + $0x498] sm:$0xff] }
 0x140   :  { %2721 = vmatpush2.bf16.msra.mxu0 %v3776_v48  ;;  %v3594_v58 = vcombine.low %v168_v5, %v172_v42 }
 0x141   :  { %2722 = vmatprep.subr.bf16.mxu0 %v3769_v50  ;;  %v3723_v50 = vcombine.high %v296_v43, %v300_v45 }
 0x142   :  { %2762 = vmatpush2.bf16.msra.mxu1 %v3522_v49  ;;  %v3595_v49 = vcombine.high %v168_v5, %v172_v42  ;;  %v240_v42 = vld [vmem:[%s5321_s1 + $0x6d8] sm:$0xff] }
 0x143   :  { %2763 = vmatprep.subr.bf16.mxu1 %v3515_v51  ;;  %v160_v51 = vld [vmem:[%s5321_s1 + $0x458] sm:$0xff] }
 0x144   :  { %2723 = vmatpush2.bf16.msra.mxu0 %v3768_v59  ;;  %v3722_v59 = vcombine.low %v296_v43, %v300_v45  ;;  %v3586_v2 = vcombine.low %v160_v51, %v164_v54  ;;  %v244_v43 = vld [vmem:[%s5321_s1 + $0x6f8] sm:$0xff] }
 0x145   :  { %2774 = vmatprep.subr.bf16.mxu0 %v3635_v60  ;;  %v3715_v60 = vcombine.high %v288_v55, %v292_v57  ;;  %v368_v45 = vld [vmem:[%s5321_s1 + $0xad8] sm:$0xff] }
 0x146   :  { %2764 = vmatpush2.bf16.msra.mxu1 %v3514_v23  ;;  %v3587_v23 = vcombine.high %v160_v51, %v164_v54  ;;  %v232_v54 = vld [vmem:[%s5321_s1 + $0x698] sm:$0xff] }
 0x147   :  { %2815 = vmatprep.subr.bf16.mxu1 %v3763_v61  ;;  %v2480_v9 = vpop.f32.mrf.mxu0  ;;  %2725 = vmatmul.mubr.bf16.vlgmr.msra.gmra.mxu0 %v4347_v52  ;;  %v152_v61 = vld [vmem:[%s5321_s1 + $0x418] sm:$0xff] }
 0x148   :  { %v4961_v13 = vadd.f32 %v2480_v9, %v4761_v46  ;;  %2775 = vmatpush1.bf16.msra.mxu0 %v3634_v3  ;;  %v184_v46 = vld [vmem:[%s5321_s1 + $0x518] sm:$0xff]  ;;  %2806 = vmatprep.mubr.bf16.mxu0 %v4027_v16  ;;  %v3714_v3 = vcombine.low %v288_v55, %v292_v57  ;;  %v3578_v10 = vcombine.low %v152_v61, %v156_v62 }
 0x149   :  { %v4963_v14 = vpop.f32.mrf.mxu1  ;;  %2766 = vmatmul.mubr.bf16.vlgmr.msra.gmra.mxu1 %v4141_v31  ;;  %v2482_v17 = vpop.f32.mrf.mxu0  ;;  %2776 = vmatprep.subr.bf16.mxu0 %v3627_v11  ;;  %v188_v31 = vld [vmem:[%s5321_s1 + $0x538] sm:$0xff]  ;;  %v3707_v11 = vcombine.high %v280_v0, %v284_v1 }
 0x14a   :  { %2816 = vmatpush1.bf16.msra.mxu1 %v3762_v4  ;;  %v4967_v20 = vadd.f32 %v2482_v17, %v4770_v56  ;;  %v312_v56 = vld [vmem:[%s5321_s1 + $0x918] sm:$0xff]  ;;  %2847 = vmatprep.mubr.bf16.mxu1 %v4159_v41  ;;  %v3611_v30 = vcombine.high %v184_v46, %v188_v31  ;;  %v3610_v63 = vcombine.low %v184_v46, %v188_v31 }
 0x14b   :  { %v4969_v21 = vpop.f32.mrf.mxu1  ;;  %2817 = vmatprep.subr.bf16.mxu1 %v3755_v6  ;;  %v2484_v24 = vpop.f32.mrf.mxu0  ;;  %v3739_v32 = vcombine.high %v312_v56, %v316_v25  ;;  %v304_v41 = vld [vmem:[%s5321_s1 + $0x8d8] sm:$0xff]  ;;  %v3738_v38 = vcombine.low %v312_v56, %v316_v25  ;;  %v3579_v4 = vcombine.high %v152_v61, %v156_v62 }
 0x14c   :  { %2777 = vmatpush1.bf16.msra.mxu0 %v3626_v15  ;;  %v3731_v40 = vcombine.high %v304_v41, %v308_v37  ;;  %v3730_v48 = vcombine.low %v304_v41, %v308_v37  ;;  %v272_v6 = vld [vmem:[%s5321_s1 + $0x7d8] sm:$0xff] }
 0x14d   :  { %v2525_v26 = vpop.f32.mrf.mxu1  ;;  %v2485_v28 = vpop.f32.mrf.mxu0  ;;  %2778 = vmatprep.subr.bf16.mxu0 %v3619_v19  ;;  %v404_v9 = vld [vmem:[%s5321_s1 + $0xbf8] sm:$0xff]  ;;  %v3699_v15 = vcombine.high %v272_v6, %v276_v7  ;;  %v3698_v31 = vcombine.low %v272_v6, %v276_v7 }
 0x14e   :  { %2818 = vmatpush1.bf16.msra.mxu1 %v3754_v18  ;;  %v3827_v17 = vcombine.high %v400_v8, %v404_v9  ;;  %v264_v18 = vld [vmem:[%s5321_s1 + $0x798] sm:$0xff]  ;;  %v3826_v24 = vcombine.low %v400_v8, %v404_v9 }
 0x14f   :  { %v2526_v16 = vpop.f32.mrf.mxu1  ;;  %2819 = vmatprep.subr.bf16.mxu1 %v3747_v22  ;;  %v268_v19 = vld [vmem:[%s5321_s1 + $0x7b8] sm:$0xff] }
 0x150   :  { %2779 = vmatpush1.bf16.msra.mxu0 %v3618_v27  ;;  %v392_v22 = vld [vmem:[%s5321_s1 + $0xb98] sm:$0xff]  ;;  %v3691_v56 = vcombine.high %v264_v18, %v268_v19 }
 0x151   :  { %2780 = vmatprep.subr.bf16.mxu0 %v3611_v30  ;;  %v396_v46 = vld [vmem:[%s5321_s1 + $0xbb8] sm:$0xff]  ;;  %v3690_v30 = vcombine.low %v264_v18, %v268_v19 }
 0x152   :  { %2820 = vmatpush1.bf16.msra.mxu1 %v3746_v29  ;;  %v3819_v25 = vcombine.high %v392_v22, %v396_v46  ;;  %v256_v26 = vld [vmem:[%s5321_s1 + $0x758] sm:$0xff]  ;;  %v3818_v16 = vcombine.low %v392_v22, %v396_v46 }
 0x153   :  { %2821 = vmatprep.subr.bf16.mxu1 %v3739_v32  ;;  %v260_v27 = vld [vmem:[%s5321_s1 + $0x778] sm:$0xff] }
 0x154   :  { %2781 = vmatpush1.bf16.msra.mxu0 %v3610_v63  ;;  %v384_v28 = vld [vmem:[%s5321_s1 + $0xb58] sm:$0xff]  ;;  %v3683_v32 = vcombine.high %v256_v26, %v260_v27 }
 0x155   :  { %2782 = vmatprep.subr.bf16.mxu0 %v3603_v39  ;;  %v388_v29 = vld [vmem:[%s5321_s1 + $0xb78] sm:$0xff] }
 0x156   :  { %2822 = vmatpush1.bf16.msra.mxu1 %v3738_v38  ;;  %v3811_v33 = vcombine.high %v384_v28, %v388_v29  ;;  %v252_v41 = vld [vmem:[%s5321_s1 + $0x738] sm:$0xff]  ;;  %v3682_v38 = vcombine.low %v256_v26, %v260_v27  ;;  %v3810_v39 = vcombine.low %v384_v28, %v388_v29  ;;  %v2864_v28 = vcombine.low %v4961_v13, %v4967_v20 }
 0x157   :  { %2823 = vmatprep.subr.bf16.mxu1 %v3731_v40  ;;  %v376_v37 = vld [vmem:[%s5321_s1 + $0xb18] sm:$0xff]  ;;  %v3675_v40 = vcombine.high %v248_v36, %v252_v41 }
 0x158   :  { %2783 = vmatpush1.bf16.msra.mxu0 %v3602_v47  ;;  %v380_v63 = vld [vmem:[%s5321_s1 + $0xb38] sm:$0xff] }
 0x159   :  { %2784 = vmatprep.subr.bf16.mxu0 %v3595_v49  ;;  %v3803_v5 = vcombine.high %v376_v37, %v380_v63  ;;  %v372_v47 = vld [vmem:[%s5321_s1 + $0xaf8] sm:$0xff]  ;;  %v3802_v49 = vcombine.low %v376_v37, %v380_v63 }
 0x15a   :  { %2824 = vmatpush1.bf16.msra.mxu1 %v3730_v48  ;;  %v3674_v48 = vcombine.low %v248_v36, %v252_v41  ;;  %v3795_v51 = vcombine.high %v368_v45, %v372_v47  ;;  %v236_v55 = vld [vmem:[%s5321_s1 + $0x6b8] sm:$0xff] }
 0x15b   :  { %2825 = vmatprep.subr.bf16.mxu1 %v3723_v50  ;;  %v3667_v50 = vcombine.high %v240_v42, %v244_v43  ;;  %v360_v57 = vld [vmem:[%s5321_s1 + $0xa98] sm:$0xff] }
 0x15c   :  { %2785 = vmatpush1.bf16.msra.mxu0 %v3594_v58  ;;  %v364_v58 = vld [vmem:[%s5321_s1 + $0xab8] sm:$0xff] }
 0x15d   :  { %2786 = vmatprep.subr.bf16.mxu0 %v3587_v23  ;;  %v3794_v23 = vcombine.low %v368_v45, %v372_v47  ;;  %v3787_v61 = vcombine.high %v360_v57, %v364_v58  ;;  %v224_v62 = vld [vmem:[%s5321_s1 + $0x658] sm:$0xff] }
 0x15e   :  { %2826 = vmatpush1.bf16.msra.mxu1 %v3722_v59  ;;  %v3666_v59 = vcombine.low %v240_v42, %v244_v43  ;;  %v228_v0 = vld [vmem:[%s5321_s1 + $0x678] sm:$0xff] }
 0x15f   :  { %2827 = vmatprep.subr.bf16.mxu1 %v3715_v60  ;;  %v3659_v60 = vcombine.high %v232_v54, %v236_v55  ;;  %v352_v1 = vld [vmem:[%s5321_s1 + $0xa58] sm:$0xff] }
 0x160   :  { %2787 = vmatpush1.bf16.msra.mxu0 %v3586_v2  ;;  %v356_v2 = vld [vmem:[%s5321_s1 + $0xa78] sm:$0xff] }
 0x161   :  { %2788 = vmatprep.subr.bf16.mxu0 %v3579_v4  ;;  %v3786_v4 = vcombine.low %v360_v57, %v364_v58  ;;  %v3779_v6 = vcombine.high %v352_v1, %v356_v2  ;;  %v216_v7 = vld [vmem:[%s5321_s1 + $0x618] sm:$0xff]  ;;  %v2910_v57 = vmul.f32 %v4967_v20, %v4967_v20  ;;  %v2909_v58 = vmul.f32 %v4961_v13, %v4961_v13 }
 0x162   :  { %2828 = vmatpush1.bf16.msra.mxu1 %v3714_v3  ;;  %v3658_v3 = vcombine.low %v232_v54, %v236_v55  ;;  %v220_v8 = vld [vmem:[%s5321_s1 + $0x638] sm:$0xff] }
 0x163   :  { %2829 = vmatprep.subr.bf16.mxu1 %v3707_v11  ;;  %v3651_v11 = vcombine.high %v224_v62, %v228_v0  ;;  %v344_v9 = vld [vmem:[%s5321_s1 + $0xa18] sm:$0xff]  ;;  %v3642_v19 = vcombine.low %v216_v7, %v220_v8 }
 0x164   :  { %2789 = vmatpush1.bf16.msra.mxu0 %v3578_v10  ;;  %v348_v10 = vld [vmem:[%s5321_s1 + $0xa38] sm:$0xff] }
 0x165   :  { %2790 = vmatprep.subr.bf16.mxu0 %v3699_v15  ;;  %v3778_v15 = vcombine.low %v352_v1, %v356_v2  ;;  %v3771_v18 = vcombine.high %v344_v9, %v348_v10  ;;  %v3770_v22 = vcombine.low %v344_v9, %v348_v10 }
 0x166   :  { %2830 = vmatpush1.bf16.msra.mxu1 %v3706_v12  ;;  %v3650_v12 = vcombine.low %v224_v62, %v228_v0 }
 0x167   :  { %2831 = vmatprep.subr.bf16.mxu1 %v3827_v17  ;;  %v3643_v17 = vcombine.high %v216_v7, %v220_v8 }
 0x168   :  { %2791 = vmatpush2.bf16.msra.mxu0 %v3698_v31 }
 0x169   :  { %2792 = vmatprep.subr.bf16.mxu0 %v3691_v56 }
 0x16a   :  { %2832 = vmatpush2.bf16.msra.mxu1 %v3826_v24 }
 0x16b   :  { %2833 = vmatprep.subr.bf16.mxu1 %v3819_v25 }
 0x16c   :  { %2793 = vmatpush2.bf16.msra.mxu0 %v3690_v30 }
 0x16d   :  { %2794 = vmatprep.subr.bf16.mxu0 %v3683_v32 }
 0x16e   :  { %2834 = vmatpush2.bf16.msra.mxu1 %v3818_v16 }
 0x16f   :  { %2835 = vmatprep.subr.bf16.mxu1 %v3811_v33 }
 0x170   :  { %2795 = vmatpush2.bf16.msra.mxu0 %v3682_v38 }
 0x171   :  { %2796 = vmatprep.subr.bf16.mxu0 %v3675_v40 }
 0x172   :  { %2836 = vmatpush2.bf16.msra.mxu1 %v3810_v39 }
 0x173   :  { %2837 = vmatprep.subr.bf16.mxu1 %v3803_v5 }
 0x174   :  { %2797 = vmatpush2.bf16.msra.mxu0 %v3674_v48 }
 0x175   :  { %2798 = vmatprep.subr.bf16.mxu0 %v3667_v50 }
 0x176   :  { %2838 = vmatpush2.bf16.msra.mxu1 %v3802_v49 }
 0x177   :  { %2839 = vmatprep.subr.bf16.mxu1 %v3795_v51 }
 0x178   :  { %2799 = vmatpush2.bf16.msra.mxu0 %v3666_v59 }
 0x179   :  { %2800 = vmatprep.subr.bf16.mxu0 %v3659_v60 }
 0x17a   :  { %2840 = vmatpush2.bf16.msra.mxu1 %v3794_v23  ;;  %v2918_v23 = vsel %vm2901_vm0, %v2910_v57, 0.0 }
 0x17b   :  { %2841 = vmatprep.subr.bf16.mxu1 %v3787_v61  ;;  %v2917_v61 = vsel %vm2901_vm0, %v2909_v58, 0.0 }
 0x17c   :  { %2801 = vmatpush2.bf16.msra.mxu0 %v3658_v3  ;;  %v2919_v1 = vadd.f32 %v2918_v23, %v2917_v61 }
 0x17d   :  { %2802 = vmatprep.subr.bf16.mxu0 %v3651_v11 }
 0x17e   :  { %2842 = vmatpush2.bf16.msra.mxu1 %v3786_v4 }
 0x17f   :  { %2843 = vmatprep.subr.bf16.mxu1 %v3779_v6 }
 0x180   :  { %2803 = vmatpush2.bf16.msra.mxu0 %v3650_v12 }
 0x181   :  { %2804 = vmatprep.subr.bf16.mxu0 %v3643_v17 }
 0x182   :  { %2844 = vmatpush2.bf16.msra.mxu1 %v3778_v15 }
 0x183   :  { %2845 = vmatprep.subr.bf16.mxu1 %v3771_v18 }
 0x184   :  { %2805 = vmatpush2.bf16.msra.mxu0 %v3642_v19 }
 0x186   :  { %2846 = vmatpush2.bf16.msra.mxu1 %v3770_v22 }
 0x187   :  { %v2562_v46 = vpop.f32.mrf.mxu0  ;;  %2807 = vmatmul.mubr.bf16.vlgmr.msra.gmra.mxu0 %v4151_v35 }
 0x188   :  { %v2563_v31 = vadd.f32 %v2562_v46, %v4963_v14 }
 0x189   :  { %v2603_v24 = vpop.f32.mrf.mxu1  ;;  %2848 = vmatmul.mubr.bf16.vlgmr.msra.gmra.mxu1 %v4347_v52  ;;  %v2564_v56 = vpop.f32.mrf.mxu0  ;;  %v2872_v52 = vrot.slane %v2864_v28, %v3979_v53 }
 0x18a   :  { %v2565_v25 = vadd.f32 %v2564_v56, %v4969_v21  ;;  %v5135_v29 = vadd.f32 %v2603_v24, %v2563_v31 }
 0x18b   :  { %v2605_v26 = vpop.f32.mrf.mxu1  ;;  %v2566_v27 = vpop.f32.mrf.mxu0 }
 0x18c   :  { %v5137_v30 = vadd.f32 %v2605_v26, %v2565_v25  ;;  %v2911_v59 = vmul.f32 %v5135_v29, %v5135_v29 }
 0x18d   :  { %v2607_v16 = vpop.f32.mrf.mxu1  ;;  %v2567_v32 = vpop.f32.mrf.mxu0 }
 0x18e   :  { %v2865_v35 = vcombine.low %v5135_v29, %v5137_v30  ;;  %v2920_v62 = vsel %vm2901_vm0, %v2911_v59, 0.0  ;;  %v2912_v0 = vmul.f32 %v5137_v30, %v5137_v30 }
 0x18f   :  { %v2608_v14 = vpop.f32.mrf.mxu1  ;;  %v2921_v4 = vadd.f32 %v2920_v62, %v2919_v1  ;;  %v3003_v1 = vld [vmem:[%s5322_s2 + $0x60] sm:$0x3] }
 0x190   :  { %v2879_v33 = vrot.slane %v2865_v35, %v3979_v53  ;;  %v2922_v11 = vsel %vm2901_vm0, %v2912_v0, 0.0 }
 0x191   :  { %v2923_v9 = vadd.f32 %v2922_v11, %v2921_v4 }
 0x192   :  { %v2880_v21 = vcombine.low %v2872_v52, %v2879_v33 }
 0x194   :  { %2900 = vst [vmem:[%s5323_s3] sm:$0xff] %v2880_v21 }
 0x1c7   :  { %v2644_v36 = vpop.f32.mrf.mxu0 }
 0x1c9   :  { %v2685_v41 = vpop.f32.mrf.mxu1  ;;  %v2646_v63 = vpop.f32.mrf.mxu0 }
 0x1ca   :  { %v2686_v37 = vadd.f32 %v2685_v41, %v2644_v36 }
 0x1cb   :  { %v2687_v38 = vpop.f32.mrf.mxu1  ;;  %v2648_v40 = vpop.f32.mrf.mxu0 }
 0x1cc   :  { %v2688_v39 = vadd.f32 %v2687_v38, %v2646_v63  ;;  %v3000_v38 = vld [vmem:[%s5322_s2 + $0x48] sm:$0x3]  ;;  %v2999_v40 = vld [vmem:[%s5322_s2 + $0x40] sm:$0x3] }
 0x1cd   :  { %v2689_v5 = vpop.f32.mrf.mxu1  ;;  %v2649_v42 = vpop.f32.mrf.mxu0  ;;  %3044 = vmatprep.subr.mxu0 %v3000_v38 }
 0x1ce   :  { %v3001_v5 = vld [vmem:[%s5322_s2 + $0x50] sm:$0x3]  ;;  %v2992_v42 = vld [vmem:[%s5322_s2 + $0x8] sm:$0xff]  ;;  %3045 = vmatpush1.xpose.msra.mxu0 %v2999_v40 }
 0x1cf   :  { %v2690_v43 = vpop.f32.mrf.mxu1  ;;  %3046 = vmatprep.subr.mxu0 %v2992_v42 }
 0x1d0   :  { %v2994_v43 = vld [vmem:[%s5322_s2 + $0x18] sm:$0xff] }
 0x207   :  { %v2726_v45 = vpop.f32.mrf.mxu0 }
 0x208   :  { %v5153_v60 = vadd.f32 %v2726_v45, %v2686_v37  ;;  %v2991_v45 = vld [vmem:[%s5322_s2] sm:$0xff] }
 0x209   :  { %v2767_v47 = vpop.f32.mrf.mxu1  ;;  %v2728_v48 = vpop.f32.mrf.mxu0  ;;  %3047 = vmatpush1.xpose.msra.mxu0 %v2991_v45 }
 0x20a   :  { %v2913_v2 = vmul.f32 %v5153_v60, %v5153_v60  ;;  %v5161_v3 = vadd.f32 %v2728_v48, %v2688_v39  ;;  %v3002_v39 = vld [vmem:[%s5322_s2 + $0x58] sm:$0x3]  ;;  %v3004_v48 = vld [vmem:[%s5322_s2 + $0x68] sm:$0x3] }
 0x20b   :  { %v2769_v49 = vpop.f32.mrf.mxu1  ;;  %v2730_v50 = vpop.f32.mrf.mxu0  ;;  %3114 = vmatprep.subr.mxu1 %v3002_v39  ;;  %3184 = vmatprep.subr.mxu0 %v3004_v48 }
 0x20c   :  { %v2914_v6 = vmul.f32 %v5161_v3, %v5161_v3  ;;  %v2924_v7 = vsel %vm2901_vm0, %v2913_v2, 0.0  ;;  %v2881_v24 = vcombine.low %v5153_v60, %v5161_v3  ;;  %3115 = vmatpush1.xpose.msra.mxu1 %v3001_v5 }
 0x20d   :  { %v2771_v51 = vpop.f32.mrf.mxu1  ;;  %v2731_v54 = vpop.f32.mrf.mxu0  ;;  %v2925_v17 = vadd.f32 %v2924_v7, %v2923_v9  ;;  %3116 = vmatprep.subr.mxu1 %v2994_v43  ;;  %v2996_v9 = vld [vmem:[%s5322_s2 + $0x28] sm:$0xff] }
 0x20e   :  { %v2926_v46 = vsel %vm2901_vm0, %v2914_v6, 0.0  ;;  %v2889_v33 = vrot.slane %v2881_v24, %v3979_v53  ;;  %v3860_v54 = vmov 1966171168   ;;  %v2995_v24 = vld [vmem:[%s5322_s2 + $0x20] sm:$0xff] }
 0x20f   :  { %v2772_v55 = vpop.f32.mrf.mxu1  ;;  %v2927_v28 = vadd.f32 %v2926_v46, %v2925_v17 }
 0x210   :  { %v3367_v55 = vunpack.c.l.s4 %v3860_v54 }
 0x212   :  { %v3368_v57 = vunpack.c.0.s8 %v3367_v55 }
 0x214   :  { %v5221_v59 = vsub.s32 %v3368_v57, %v3964_v44  ;;  %v3005_v44 = vld [vmem:[%s5322_s2 + $0x70] sm:$0x3] }
 0x247   :  { %v2808_v8 = vpop.f32.mrf.mxu0 }
 0x248   :  { %v2809_v10 = vadd.f32 %v2808_v8, %v2767_v47  ;;  %v2993_v47 = vld [vmem:[%s5322_s2 + $0x10] sm:$0xff] }
 0x249   :  { %v2849_v12 = vpop.f32.mrf.mxu1  ;;  %v2810_v15 = vpop.f32.mrf.mxu0  ;;  %3117 = vmatpush1.xpose.msra.mxu1 %v2993_v47 }
 0x24a   :  { %v5167_v18 = vadd.f32 %v2849_v12, %v2809_v10  ;;  %v2811_v19 = vadd.f32 %v2810_v15, %v2769_v49  ;;  %v3006_v49 = vld [vmem:[%s5322_s2 + $0x78] sm:$0x3] }
 0x24b   :  { %v2851_v22 = vpop.f32.mrf.mxu1  ;;  %v2812_v31 = vpop.f32.mrf.mxu0  ;;  %3828 = vmatprep.subr.msk.mxu1 %vm3007_vm8, %v3006_v49  ;;  %v2998_v15 = vld [vmem:[%s5322_s2 + $0x38] sm:$0xff] }
 0x24c   :  { %v2852_v56 = vadd.f32 %v2851_v22, %v2811_v19  ;;  %v2915_v26 = vmul.f32 %v5167_v18, %v5167_v18 }
 0x24d   :  { %v2853_v25 = vpop.f32.mrf.mxu1  ;;  %v2813_v27 = vpop.f32.mrf.mxu0 }
 0x24e   :  { %v2882_v16 = vcombine.low %v5167_v18, %v2852_v56  ;;  %v2916_v35 = vmul.f32 %v2852_v56, %v2852_v56  ;;  %v2928_v14 = vsel %vm2901_vm0, %v2915_v26, 0.0 }
 0x24f   :  { %v2854_v32 = vpop.f32.mrf.mxu1  ;;  %v2929_v52 = vadd.f32 %v2928_v14, %v2927_v28 }
 0x250   :  { %v2896_v21 = vrot.slane %v2882_v16, %v3979_v53  ;;  %v2931_v36 = vsel %vm2930_vm4, %v2916_v35, 0.0 }
 0x251   :  { %v2932_v41 = vadd.f32 %v2931_v36, %v2929_v52 }
 0x252   :  { %v2897_v63 = vcombine.low %v2889_v33, %v2896_v21 }
 0x253   :  { %2933 = vadd.xlane.f32.xlu0 %v2932_v41 }
 0x254   :  { %2908 = vst.msk [vmem:[%s5323_s3 + $0x8] sm:$0xff] %vm5180_vm7, %v2897_v63 }
 0x2dc   :  { %v2934_v50 = vpop.xlane.xlu0 %2933 }
 0x2dd   :  { %v2935_v51 = vmax.f32 %v2934_v50, 1e-12 }
 0x2df   :  { %3835 = vrsqrt.f32 %v2935_v51 }
 0x2ec   :  { %v3836_v58 = vpop.eup %3835 }
 0x2ed   :  { %v5224_v23 = vmul.f32 %v3836_v58, %v4967_v20  ;;  %v5227_v61 = vmul.f32 %v3836_v58, %v5137_v30  ;;  %v5230_v62 = vmul.f32 %v3836_v58, %v4961_v13  ;;  %v5233_v0 = vmul.f32 %v3836_v58, %v5135_v29 }
 0x2ee   :  { %v5242_v20 = vmul.f32 %v3836_v58, %v5161_v3  ;;  %v5244_v2 = vmul.f32 %v3836_v58, %v2852_v56  ;;  %v5247_v30 = vmul.f32 %v3836_v58, %v5153_v60  ;;  %v5250_v13 = vmul.f32 %v3836_v58, %v5167_v18  ;;  %v2997_v56 = vld [vmem:[%s5322_s2 + $0x30] sm:$0xff] }
 0x2ef   :  { %3080 = vmatprep.mubr.f32.mxu0 %v5224_v23  ;;  %v3305_v29 = vsel %vm2901_vm0, %v5224_v23, 0.0  ;;  %3150 = vmatprep.mubr.f32.mxu1 %v5227_v61  ;;  %v3319_v4 = vsel %vm2901_vm0, %v5227_v61, 0.0  ;;  %v3298_v3 = vsel %vm2901_vm0, %v5230_v62, 0.0  ;;  %v3312_v60 = vsel %vm2901_vm0, %v5233_v0, 0.0 }
 0x2f0   :  { %v3306_v11 = vrot.slane %v3305_v29, 4  ;;  %v3320_v6 = vrot.slane %v3319_v4, 4  ;;  %3081 = vmatmul.mubr.f32.vlgmr.msra.gmra.mxu0 %v5230_v62  ;;  %v3299_v7 = vrot.slane %v3298_v3, 4  ;;  %3151 = vmatmul.mubr.f32.vlgmr.msra.gmra.mxu1 %v5233_v0  ;;  %v3313_v8 = vrot.slane %v3312_v60, 4 }
 0x2f1   :  { %3185 = vmatpush1.xpose.msra.mxu0 %v3003_v1  ;;  %3255 = vmatpush1.xpose.msra.mxu1 %v3005_v44  ;;  %v3333_v10 = vsel %vm2901_vm0, %v5242_v20, 0.0  ;;  %v3347_v12 = vsel %vm2930_vm4, %v5244_v2, 0.0  ;;  %v3326_v17 = vsel %vm2901_vm0, %v5247_v30, 0.0  ;;  %v3340_v18 = vsel %vm2901_vm0, %v5250_v13, 0.0 }
 0x2f2   :  { %v3307_v19 = vadd.f32 %v3306_v11, %v3305_v29  ;;  %v3321_v22 = vadd.f32 %v3320_v6, %v3319_v4  ;;  %v3300_v46 = vadd.f32 %v3299_v7, %v3298_v3  ;;  %v3314_v31 = vadd.f32 %v3313_v8, %v3312_v60  ;;  %3220 = vmatprep.mubr.f32.mxu0 %v5242_v20 }
 0x2f3   :  { %v3334_v25 = vrot.slane %v3333_v10, 4  ;;  %3830 = vmatprep.mubr.msk.f32.mxu1 %vm3007_vm8, %v5244_v2  ;;  %v3348_v26 = vrot.slane %v3347_v12, 4  ;;  %3186 = vmatprep.subr.mxu0 %v2996_v9  ;;  %v3327_v27 = vrot.slane %v3326_v17, 4  ;;  %v3341_v28 = vrot.slane %v3340_v18, 4 }
 0x2f4   :  { %v3308_v16 = vrot.slane %v3307_v19, 2  ;;  %v3322_v32 = vrot.slane %v3321_v22, 2  ;;  %v3301_v35 = vrot.slane %v3300_v46, 2  ;;  %v3315_v14 = vrot.slane %v3314_v31, 2  ;;  %3829 = vmatprep.subr.msk.mxu1 %vm3007_vm8, %v2998_v15 }
 0x2f5   :  { %v3335_v52 = vadd.f32 %v3334_v25, %v3333_v10  ;;  %v3349_v33 = vadd.f32 %v3348_v26, %v3347_v12  ;;  %3187 = vmatpush1.xpose.msra.mxu0 %v2995_v24  ;;  %3257 = vmatpush1.xpose.msra.mxu1 %v2997_v56  ;;  %v3328_v21 = vadd.f32 %v3327_v27, %v3326_v17 }
 0x2f6   :  { %v3309_v36 = vadd.f32 %v3308_v16, %v3307_v19  ;;  %v3323_v41 = vadd.f32 %v3322_v32, %v3321_v22  ;;  %v3302_v63 = vadd.f32 %v3301_v35, %v3300_v46  ;;  %v3316_v38 = vadd.f32 %v3315_v14, %v3314_v31 }
 0x2f7   :  { %v3336_v39 = vrot.slane %v3335_v52, 2  ;;  %v3350_v40 = vrot.slane %v3349_v33, 2  ;;  %v3329_v5 = vrot.slane %v3328_v21, 2  ;;  %v3342_v42 = vadd.f32 %v3341_v28, %v3340_v18 }
 0x2f8   :  { %v3310_v43 = vrot.slane %v3309_v36, 1  ;;  %v3324_v45 = vrot.slane %v3323_v41, 1  ;;  %v3303_v47 = vrot.slane %v3302_v63, 1  ;;  %v3317_v48 = vrot.slane %v3316_v38, 1  ;;  %3221 = vmatmul.mubr.f32.vlgmr.msra.gmra.mxu0 %v5247_v30  ;;  %3291 = vmatmul.mubr.f32.vlgmr.msra.gmra.mxu1 %v5250_v13 }
 0x2f9   :  { %v3337_v49 = vadd.f32 %v3336_v39, %v3335_v52  ;;  %v3351_v50 = vadd.f32 %v3350_v40, %v3349_v33  ;;  %v3330_v51 = vadd.f32 %v3329_v5, %v3328_v21  ;;  %v3343_v54 = vrot.slane %v3342_v42, 2 }
 0x2fa   :  { %v3311_v55 = vadd.f32 %v3310_v43, %v3309_v36  ;;  %v3325_v57 = vadd.f32 %v3324_v45, %v3323_v41  ;;  %v3304_v58 = vadd.f32 %v3303_v47, %v3302_v63  ;;  %v3318_v1 = vadd.f32 %v3317_v48, %v3316_v38 }
 0x2fb   :  { %v3338_v44 = vrot.slane %v3337_v49, 1  ;;  %v3352_v29 = vrot.slane %v3351_v50, 1  ;;  %v3331_v4 = vrot.slane %v3330_v51, 1  ;;  %v3344_v3 = vadd.f32 %v3343_v54, %v3342_v42 }
 0x2fc   :  { %v3362_v60 = vcombine.low %v3304_v58, %v3311_v55  ;;  %v3363_v11 = vcombine.low %v3318_v1, %v3325_v57  ;;  %v2953_v6 = vcombine.low %v5230_v62, %v5224_v23  ;;  %v2954_v7 = vcombine.low %v5233_v0, %v5227_v61 }
 0x2fd   :  { %v3339_v8 = vadd.f32 %v3338_v44, %v3337_v49  ;;  %v3353_v9 = vadd.f32 %v3352_v29, %v3351_v50  ;;  %v3332_v10 = vadd.f32 %v3331_v4, %v3330_v51  ;;  %v3345_v12 = vrot.slane %v3344_v3, 1 }
 0x2fe   :  { %v3372_v15 = vrot.slane %v3362_v60, %v5221_v59  ;;  %v3379_v17 = vrot.slane %v3363_v11, %v5221_v59  ;;  %v2961_v18 = vrot.slane %v2953_v6, %v3979_v53  ;;  %v2968_v19 = vrot.slane %v2954_v7, %v3979_v53 }
 0x2ff   :  { %v3364_v22 = vcombine.low %v3332_v10, %v3339_v8  ;;  %v3346_v46 = vadd.f32 %v3345_v12, %v3344_v3  ;;  %v2970_v23 = vcombine.low %v5247_v30, %v5242_v20  ;;  %v2971_v61 = vcombine.low %v5250_v13, %v5244_v2 }
 0x300   :  { %v3394_v62 = vcombine.low %v3372_v15, %v3379_v17  ;;  %v2969_v0 = vcombine.low %v2961_v18, %v2968_v19 }
 0x301   :  { %v3386_v31 = vrot.slane %v3364_v22, %v5221_v59  ;;  %v3365_v24 = vcombine.low %v3346_v46, %v3353_v9  ;;  %v2978_v56 = vrot.slane %v2970_v23, %v3979_v53  ;;  %v2985_v25 = vrot.slane %v2971_v61, %v3979_v53 }
 0x302   :  { %2989 = vst [vmem:[#allocation2] sm:$0xff] %v2969_v0  ;;  %v3402_v28 = vrot.slane %v3394_v62, %v5221_v59 }
 0x303   :  { %v3393_v26 = vrot.slane %v3365_v24, %v5221_v59  ;;  %v2986_v27 = vcombine.low %v2978_v56, %v2985_v25 }
 0x305   :  { %v3395_v16 = vcombine.low %v3386_v31, %v3393_v26  ;;  %2990 = vst.msk [vmem:[#allocation2 + $0x8] sm:$0xff] %vm5180_vm7, %v2986_v27 }
 0x307   :  { %v3409_v20 = vrot.slane %v3395_v16, %v5221_v59 }
 0x309   :  { %v3410_v2 = vcombine.low %v3402_v28, %v3409_v20 }
 0x30b   :  { %3416 = vst.msk [vmem:[%s5326_s6] sm:$0xff] %vm3414_vm9, %v3410_v2 }
 0x30c   :  { %3848 = shalt.err (!%p3845_p4)
}
 0x30d   :  { %3428 = dma.vmem_to_hbm [thread:$0]  %s3426_s9, 256, %s5324_s4, [#allocation3]   ;;  %vm3296_vm10 = vcmask 74752  }
 0x3b0   :  { %v3082_v34 = vpop.f32.mrf.mxu0  ;;  %v3152_v53 = vpop.f32.mrf.mxu1 }
 0x3b1   :  { %v3153_v30 = vadd.f32 %v3152_v53, %v3082_v34 }
 0x3b2   :  { %v3084_v37 = vpop.f32.mrf.mxu0  ;;  %v3154_v59 = vpop.f32.mrf.mxu1 }
 0x3b8   :  { %v3222_v13 = vpop.f32.mrf.mxu0  ;;  %v3292_v32 = vpop.f32.mrf.mxu1 }
 0x3b9   :  { %v3223_v35 = vadd.f32 %v3222_v13, %v3153_v30 }
 0x3ba   :  { %v3224_v14 = vpop.f32.mrf.mxu0  ;;  %v3294_v52 = vpop.f32.mrf.mxu1 }
 0x3bb   :  { %v3293_v33 = vadd.f32 %v3292_v32, %v3223_v35 }
 0x3bd   :  { %3297 = vst.msk [vmem:[%s5325_s5] sm:$0x3] %vm3296_vm10, %v3293_v33 }
 0x3be   :  { %3857 = dma.done.wait [#allocation3], 256  }
 0x3bf   :  { %3858 = vsyncadd [#allocation3], 4294967040 }
 0x3c0   :  { %3442 = vsyncpa [#allocation3], 1 }

</bundles_post_ra>
